<compile_context>
chip_gen: v7x
topology: tpu7x:2x2x1
jax: 0.10.0
libtpu: 0.0.40
codegen_flags: <defaults>
</compile_context>

<pallas_src>
import functools

import jax
import jax.numpy as jnp
from jax.experimental import pallas as pl
from jax.experimental.pallas import tpu as pltpu


def _round_up(x, m):
    return ((x + m - 1) // m) * m


# ------------------------------- kernel -------------------------------------

def _make_kernel(num_common, final_activation):
    """Kernel refs: x(f32), w_common[0..num_common-1], w_head_concat, bias_pack, out."""

    def kernel(*refs):
        x_ref = refs[0]
        w_refs = refs[1:1 + num_common]
        wh_ref = refs[1 + num_common]
        b_ref = refs[2 + num_common]
        o_ref = refs[3 + num_common]

        compute_dtype = wh_ref.dtype                 # bf16 weights
        b = b_ref[...]                               # (num_common + 1, width) f32
        # In-kernel f32 -> bf16 cast of the activations (no extra HBM pass).
        h = x_ref[...].astype(compute_dtype)         # (bt, d_in)
        # Common trunk: Linear + ReLU, f32 accumulation on the MXU.
        for li in range(num_common):
            w = w_refs[li]
            acc = jnp.dot(h, w[...], preferred_element_type=jnp.float32)
            acc = acc + b[li:li + 1, :w.shape[1]]
            h = jnp.maximum(acc, 0.0).astype(compute_dtype)
        # All objective heads fused into one lane-dense (>=128 wide) matmul.
        out = jnp.dot(h, wh_ref[...], preferred_element_type=jnp.float32)
        out = out + b[num_common:num_common + 1, :wh_ref.shape[1]]
        if final_activation:
            # Literal PyTorch behaviour: final head layer is also activated.
            out = jnp.maximum(out, 0.0)
        o_ref[...] = out.astype(o_ref.dtype)

    return kernel


# --------------------------- jitted fused forward ----------------------------

@functools.partial(
    jax.jit,
    static_argnames=("batch_tile", "final_activation", "out_dtype",
                     "d_valid", "n_obj"))
def _fused_mlp(x, w_common, w_head, bias_pack, *, batch_tile,
               final_activation, out_dtype, d_valid, n_obj):
    n, d_in = x.shape
    d_out_pad = w_head.shape[1]
    num_common = len(w_common)

    # Large batch tile amortises the ~0.35us per-grid-step pipeline overhead;
    # keep >= 2 grid steps when the batch allows so the 'parallel' axis shards
    # across both v7x TensorCores; clamp for tiny batches.
    if n >= 512:
        bt = min(batch_tile, _round_up(-(-n // 2), 256))
    else:
        bt = max(n, 8)
    bt = _round_up(bt, 8)
    n_pad = _round_up(n, bt)
    if n_pad != n:
        x = jnp.pad(x, ((0, n_pad - n), (0, 0)))     # fused into this jit
    grid = (n_pad // bt,)

    in_specs = [pl.BlockSpec((bt, d_in), lambda i: (i, 0))]      # x: batch-tiled
    for w in w_common:                                           # weights resident
        in_specs.append(pl.BlockSpec(w.shape, lambda i: (0, 0)))
    in_specs.append(pl.BlockSpec(w_head.shape, lambda i: (0, 0)))
    in_specs.append(pl.BlockSpec(bias_pack.shape, lambda i: (0, 0)))

    itemsize = lambda a: jnp.dtype(a.dtype).itemsize
    w_bytes = (sum(int(w.size) * itemsize(w) for w in w_common)
               + int(w_head.size) * itemsize(w_head)
               + int(bias_pack.size) * itemsize(bias_pack))
    flops = 2 * n_pad * (sum(w.shape[0] * w.shape[1] for w in w_common)
                         + w_head.shape[0] * w_head.shape[1])
    bytes_accessed = (n_pad * d_in * itemsize(x)
                      + n_pad * d_out_pad * jnp.dtype(out_dtype).itemsize
                      + w_bytes)

    # Double-buffered VMEM footprint with headroom.  Explicit limit keeps big
    # tiles usable past v5e's 16 MiB scoped default while staying comfortably
    # inside v7x's 64 MiB physical VMEM.
    vmem_needed = 2 * (bt * d_in * itemsize(x)
                       + bt * d_out_pad * jnp.dtype(out_dtype).itemsize
                       + w_bytes)
    vmem_limit = int(min(max(4 * vmem_needed, 4 << 20), 48 << 20))

    out = pl.pallas_call(
        _make_kernel(num_common, final_activation),
        out_shape=jax.ShapeDtypeStruct((n_pad, d_out_pad), out_dtype),
        grid=grid,
        in_specs=in_specs,
        out_specs=pl.BlockSpec((bt, d_out_pad), lambda i: (i, 0)),
        compiler_params=pltpu.CompilerParams(
            dimension_semantics=("parallel",),     # shards grid over v7x's 2 TCs
            vmem_limit_bytes=vmem_limit),
        cost_estimate=pl.CostEstimate(
            flops=int(flops), transcendentals=0,
            bytes_accessed=int(bytes_accessed)),
    )(x, *w_common, w_head, bias_pack)

    # Drop batch padding / lane padding and expose a layout-free per-objective
    # axis (no per-objective copies; slicing stays inside this jit).
    out = out[:n, :d_valid]
    return out.reshape(n, n_obj, d_valid // n_obj)


# ------------------------------ public wrapper -------------------------------

def pack_mlp_params(common_params, head_params, objectives, *,
                    compute_dtype=jnp.bfloat16):
    """One-time parameter packing (do this at setup, NOT per forward call).

    common_params: list of (w (fan_in, fan_out), b (fan_out,)) for the trunk.
    head_params:   {obj: (w (fan_in, d_out), b (d_out,))} -- each head is one
                   Linear (i.e. num_common_lyr == len(layer_channels) - 2).
    Returns (packed_arrays, meta).
    """
    # TODO(synk): objective heads with more than one Linear layer would need
    # block-diagonal head weights to stay fused; not implemented here.
    objectives = tuple(objectives)
    d_out = int(head_params[objectives[0]][0].shape[1])

    w_common = tuple(jnp.asarray(w).astype(compute_dtype) for w, _ in common_params)
    b_common = [jnp.asarray(b).astype(jnp.float32) for _, b in common_params]

    # Concatenate all objective heads along the output axis and pad the width
    # up to a multiple of 128 so output stores are lane-dense / unmasked.
    w_head = jnp.concatenate(
        [head_params[o][0] for o in objectives], axis=1).astype(compute_dtype)
    b_head = jnp.concatenate(
        [head_params[o][1] for o in objectives], axis=0).astype(jnp.float32)
    d_cat = int(w_head.shape[1])
    d_cat_pad = max(_round_up(d_cat, 128), 128)
    if d_cat_pad != d_cat:
        w_head = jnp.pad(w_head, ((0, 0), (0, d_cat_pad - d_cat)))
        b_head = jnp.pad(b_head, (0, d_cat_pad - d_cat))

    # Pack all biases into one f32 operand (fewer DMA descriptors per step).
    widths = [int(w.shape[1]) for w in w_common] + [d_cat_pad]
    bias_pack = jnp.zeros((len(w_common) + 1, max(widths)), jnp.float32)
    for i, b in enumerate(b_common):
        bias_pack = bias_pack.at[i, :b.shape[0]].set(b)
    bias_pack = bias_pack.at[len(w_common), :b_head.shape[0]].set(b_head)

    packed = {"w_common": w_common, "w_head": w_head, "bias_pack": bias_pack}
    meta = {"objectives": objectives, "d_out": d_out, "d_cat": d_cat}
    return packed, meta


def mlp_multi_objective_forward(x, packed, meta, *, batch_tile=2048,
                                final_activation=True,
                                out_dtype=jnp.bfloat16):
    """Fused forward.  Returns (N, n_objectives, d_out).

    Keep the result concatenated; use `split_objectives` *inside the
    consumer's jit* if a PyTorch-style per-objective dict is required
    (materialising 16-lane-wide slices eagerly doubles output HBM traffic).
    """
    return _fused_mlp(x, packed["w_common"], packed["w_head"],
                      packed["bias_pack"],
                      batch_tile=int(batch_tile),
                      final_activation=bool(final_activation),
                      out_dtype=out_dtype,
                      d_valid=meta["d_cat"],
                      n_obj=len(meta["objectives"]))


def split_objectives(out_cat, objectives):
    """PyTorch-parity dict view.  Call inside the consumer's jit."""
    return {o: out_cat[:, k] for k, o in enumerate(objectives)}


# ----------------------------- init & reference ------------------------------

def _xavier_normal(key, fan_in, fan_out, gain):
    # torch.nn.init.xavier_normal_ (std symmetric in fan_in/fan_out, so the
    # (fan_in, fan_out) storage layout does not change the distribution).
    std = gain * (2.0 / (fan_in + fan_out)) ** 0.5
    return std * jax.random.normal(key, (fan_in, fan_out), dtype=jnp.float32)


def _linear_init(key, fan_in, fan_out):
    kw, kb = jax.random.split(key)
    gain = 2.0 ** 0.5                       # nn.init.calculate_gain('relu')
    w = _xavier_normal(kw, fan_in, fan_out, gain)
    bound = 1.0 / (fan_in ** 0.5)           # torch Linear default bias init
    b = jax.random.uniform(kb, (fan_out,), minval=-bound, maxval=bound,
                           dtype=jnp.float32)
    return w, b


def init_mlp_multi_objective_params(key, input_dim, output_dim, objectives,
                                    hidden_channels, num_common_lyr):
    layer_channels = [input_dim] + list(hidden_channels) + [output_dim]
    assert num_common_lyr == len(layer_channels) - 2, (
        "fused kernel expects each objective head to be a single Linear")
    keys = jax.random.split(key, num_common_lyr + len(objectives))
    common = [_linear_init(keys[i], layer_channels[i], layer_channels[i + 1])
              for i in range(num_common_lyr)]
    heads = {obj: _linear_init(keys[num_common_lyr + k],
                               layer_channels[-2], layer_channels[-1])
             for k, obj in enumerate(objectives)}
    return common, heads


def mlp_multi_objective_reference(x, common_params, head_params, objectives,
                                  final_activation=True,
                                  compute_dtype=jnp.bfloat16):
    h = x.astype(compute_dtype)
    for w, b in common_params:
        acc = jnp.dot(h, w.astype(compute_dtype),
                      preferred_element_type=jnp.float32) + b
        h = jnp.maximum(acc, 0.0).astype(compute_dtype)
    out = {}
    for obj in objectives:
        w, b = head_params[obj]
        o = jnp.dot(h, w.astype(compute_dtype),
                    preferred_element_type=jnp.float32) + b
        if final_activation:
            o = jnp.maximum(o, 0.0)
        out[obj] = o
    return out


# ----------------------------------- demo ------------------------------------

if __name__ == "__main__":
    key = jax.random.PRNGKey(0)
    k_x, k_p = jax.random.split(key)

    # Mirrors MLP_multi_objective(input_dim=32, output_dim=16,
    # hidden_channels=[32, 32], num_common_lyr=2, 8 objectives, bn=False).
    input_dim, output_dim = 32, 16
    hidden_channels = [32, 32]
    num_common_lyr = 2
    objectives = tuple(f"obj{i}" for i in range(8))   # 8*16 = 128-lane output

    batch = 600   # ragged: padded to 1024 with bt=512 -> grid = (2,)
    x = jax.random.normal(k_x, (batch, input_dim), dtype=jnp.float32)
    common_params, head_params = init_mlp_multi_objective_params(
        k_p, input_dim, output_dim, objectives, hidden_channels, num_common_lyr)

    # One-time packing (bf16 weights, fused + padded head, packed biases).
    packed, meta = pack_mlp_params(common_params, head_params, objectives)

    out_cat = mlp_multi_objective_forward(
        x, packed, meta, batch_tile=2048, final_activation=True,
        out_dtype=jnp.bfloat16)
    out_cat = jax.block_until_ready(out_cat)
    assert out_cat.shape == (batch, len(objectives), output_dim)

    # PyTorch-parity dict (fine here; in production slice inside consumer jit).
    out = split_objectives(out_cat, objectives)

    ref = mlp_multi_objective_reference(
        x, common_params, head_params, objectives, final_activation=True)

    for obj in objectives:
        assert out[obj].shape == (batch, output_dim)
        assert jnp.allclose(out[obj].astype(jnp.float32), ref[obj],
                            atol=2e-2, rtol=2e-2), (
            f"mismatch vs reference for {obj}")

    print("KERNEL_OK")
</pallas_src>

<mosaic_0001>
module attributes {stable_mosaic.version = 11 : i64} {
  func.func @kernel(%arg0: i32, %arg1: memref<512x32xf32, #tpu.memory_space<vmem>>, %arg2: memref<32x32xbf16, #tpu.memory_space<vmem>>, %arg3: memref<32x32xbf16, #tpu.memory_space<vmem>>, %arg4: memref<32x128xbf16, #tpu.memory_space<vmem>>, %arg5: memref<3x128xf32, #tpu.memory_space<vmem>>, %arg6: memref<512x128xbf16, #tpu.memory_space<vmem>>) attributes {dimension_semantics = [#tpu.dimension_semantics<parallel>], iteration_bounds = array<i64: 2>, scalar_prefetch = 0 : i64, scratch_operands = 0 : i64, tpu.core_type = #tpu.core_type<tc>, window_params = [{transform_indices = @transform_0, window_bounds = array<i64: 512, 32>}, {pipeline_mode = #tpu.pipeline_mode<synchronous>, transform_indices = @transform_1, window_bounds = array<i64: 32, 32>}, {pipeline_mode = #tpu.pipeline_mode<synchronous>, transform_indices = @transform_2, window_bounds = array<i64: 32, 32>}, {pipeline_mode = #tpu.pipeline_mode<synchronous>, transform_indices = @transform_3, window_bounds = array<i64: 32, 128>}, {pipeline_mode = #tpu.pipeline_mode<synchronous>, transform_indices = @transform_4, window_bounds = array<i64: 3, 128>}, {transform_indices = @transform_5, window_bounds = array<i64: 512, 128>}]} {
    %c0 = arith.constant 0 : index
    %c0_0 = arith.constant 0 : index
    %0 = vector.load %arg5[%c0, %c0_0] : memref<3x128xf32, #tpu.memory_space<vmem>>, vector<3x128xf32>
    %c0_1 = arith.constant 0 : index
    %c0_2 = arith.constant 0 : index
    %1 = vector.load %arg1[%c0_1, %c0_2] : memref<512x32xf32, #tpu.memory_space<vmem>>, vector<512x32xf32>
    %2 = arith.truncf %1 : vector<512x32xf32> to vector<512x32xbf16>
    %c0_3 = arith.constant 0 : index
    %c0_4 = arith.constant 0 : index
    %3 = vector.load %arg2[%c0_3, %c0_4] : memref<32x32xbf16, #tpu.memory_space<vmem>>, vector<32x32xbf16>
    %cst = arith.constant dense<0.000000e+00> : vector<512x32xf32>
    %4 = tpu.matmul %2, %3, %cst {dimension_numbers = #tpu.dot_dimension_numbers<[1], [0], [0], [1], [0, 0, 1, 1], [], []>} : vector<512x32xbf16>, vector<32x32xbf16>, vector<512x32xf32> -> vector<512x32xf32>
    %5 = vector.extract_strided_slice %0 {offsets = [0, 0], sizes = [1, 32], strides = [1, 1]} : vector<3x128xf32> to vector<1x32xf32>
    %6 = vector.broadcast %5 : vector<1x32xf32> to vector<512x32xf32>
    %7 = arith.addf %4, %6 : vector<512x32xf32>
    %cst_5 = arith.constant 0.000000e+00 : f32
    %8 = vector.broadcast %cst_5 : f32 to vector<512x32xf32>
    %9 = arith.maximumf %7, %8 : vector<512x32xf32>
    %10 = arith.truncf %9 : vector<512x32xf32> to vector<512x32xbf16>
    %c0_6 = arith.constant 0 : index
    %c0_7 = arith.constant 0 : index
    %11 = vector.load %arg3[%c0_6, %c0_7] : memref<32x32xbf16, #tpu.memory_space<vmem>>, vector<32x32xbf16>
    %cst_8 = arith.constant dense<0.000000e+00> : vector<512x32xf32>
    %12 = tpu.matmul %10, %11, %cst_8 {dimension_numbers = #tpu.dot_dimension_numbers<[1], [0], [0], [1], [0, 0, 1, 1], [], []>} : vector<512x32xbf16>, vector<32x32xbf16>, vector<512x32xf32> -> vector<512x32xf32>
    %13 = vector.extract_strided_slice %0 {offsets = [1, 0], sizes = [1, 32], strides = [1, 1]} : vector<3x128xf32> to vector<1x32xf32>
    %14 = vector.broadcast %13 : vector<1x32xf32> to vector<512x32xf32>
    %15 = arith.addf %12, %14 : vector<512x32xf32>
    %cst_9 = arith.constant 0.000000e+00 : f32
    %16 = vector.broadcast %cst_9 : f32 to vector<512x32xf32>
    %17 = arith.maximumf %15, %16 : vector<512x32xf32>
    %18 = arith.truncf %17 : vector<512x32xf32> to vector<512x32xbf16>
    %c0_10 = arith.constant 0 : index
    %c0_11 = arith.constant 0 : index
    %19 = vector.load %arg4[%c0_10, %c0_11] : memref<32x128xbf16, #tpu.memory_space<vmem>>, vector<32x128xbf16>
    %cst_12 = arith.constant dense<0.000000e+00> : vector<512x128xf32>
    %20 = tpu.matmul %18, %19, %cst_12 {dimension_numbers = #tpu.dot_dimension_numbers<[1], [0], [0], [1], [0, 0, 1, 1], [], []>} : vector<512x32xbf16>, vector<32x128xbf16>, vector<512x128xf32> -> vector<512x128xf32>
    %21 = vector.extract_strided_slice %0 {offsets = [2, 0], sizes = [1, 128], strides = [1, 1]} : vector<3x128xf32> to vector<1x128xf32>
    %22 = vector.broadcast %21 : vector<1x128xf32> to vector<512x128xf32>
    %23 = arith.addf %20, %22 : vector<512x128xf32>
    %cst_13 = arith.constant 0.000000e+00 : f32
    %24 = vector.broadcast %cst_13 : f32 to vector<512x128xf32>
    %25 = arith.maximumf %23, %24 : vector<512x128xf32>
    %26 = arith.truncf %25 : vector<512x128xf32> to vector<512x128xbf16>
    %c0_14 = arith.constant 0 : index
    %c0_15 = arith.constant 0 : index
    %27 = vector.load %arg6[%c0_14, %c0_15] : memref<512x128xbf16, #tpu.memory_space<vmem>>, vector<512x128xbf16>
    tpu.vector_store %arg6[%c0_14, %c0_15], %26 {strides = array<i32>} : memref<512x128xbf16, #tpu.memory_space<vmem>>, vector<512x128xbf16>,
    return
  }
  func.func @transform_0(%arg0: i32) -> (i32, i32) {
    %c0_i32 = arith.constant 0 : i32
    %c0_i32_0 = arith.constant 0 : i32
    return %arg0, %c0_i32 : i32, i32
  }
  func.func @transform_1(%arg0: i32) -> (i32, i32) {
    %c0_i32 = arith.constant 0 : i32
    %c0_i32_0 = arith.constant 0 : i32
    %c0_i32_1 = arith.constant 0 : i32
    return %c0_i32, %c0_i32_0 : i32, i32
  }
  func.func @transform_2(%arg0: i32) -> (i32, i32) {
    %c0_i32 = arith.constant 0 : i32
    %c0_i32_0 = arith.constant 0 : i32
    %c0_i32_1 = arith.constant 0 : i32
    return %c0_i32, %c0_i32_0 : i32, i32
  }
  func.func @transform_3(%arg0: i32) -> (i32, i32) {
    %c0_i32 = arith.constant 0 : i32
    %c0_i32_0 = arith.constant 0 : i32
    %c0_i32_1 = arith.constant 0 : i32
    return %c0_i32, %c0_i32_0 : i32, i32
  }
  func.func @transform_4(%arg0: i32) -> (i32, i32) {
    %c0_i32 = arith.constant 0 : i32
    %c0_i32_0 = arith.constant 0 : i32
    %c0_i32_1 = arith.constant 0 : i32
    return %c0_i32, %c0_i32_0 : i32, i32
  }
  func.func @transform_5(%arg0: i32) -> (i32, i32) {
    %c0_i32 = arith.constant 0 : i32
    %c0_i32_0 = arith.constant 0 : i32
    return %arg0, %c0_i32 : i32, i32
  }
}

</mosaic_0001>

<bundles_post_ra>
// kernel: _fused_mlp.1
= control target key start
LH: loop header
LB: loop body
LE: loop exit
PB: predicated region body
PF: predicated region fallthrough
CT: control target
= control target key end

     0   :  { %s2969_s18 = smov 0   ;;  %s3447_s0 = inlined_call_operand.vmem [shape: f32[1024,32], index: 0, kind: input, shape index: {}]   ;;  %s3448_s1 = inlined_call_operand.vmem [shape: bf16[32,32], index: 1, kind: input, shape index: {}]   ;;  %s3449_s2 = inlined_call_operand.vmem [shape: bf16[32,32], index: 2, kind: input, shape index: {}]   ;;  %s3450_s3 = inlined_call_operand.vmem [shape: bf16[32,128], index: 3, kind: input, shape index: {}]   ;;  %s3451_s4 = inlined_call_operand.vmem [shape: f32[3,128], index: 4, kind: input, shape index: {}]   ;;  %s3452_s5 = inlined_call_operand.vmem [shape: bf16[1024,128], index: 5, kind: output, shape index: {}]  }
   0x1 LB: > { %s2174_s19 = sadd.s32 4294967295, %s2937_s18   ;;  %p2178_p0 = scmp.ge.s32.totalorder %s2937_s18, 1  ;;  %s2937_s18 = sphi %s2969_s18, %s15_s18  }
   0x2   : > { %p188_p1 = scmp.lt.s32.totalorder %s2937_s18, 3 }
   0x4   : > { %p189_p2 = pnand %p2178_p0, %p188_p1 }
   0x5   : > { %v2924_v0 = vld [vmem:[%s3448_s1] sm:$0xff] (!%p189_p2)   ;;  %s2179_s22 = sshll.u32 (!%p189_p2), %s2174_s19, 6  ;;  %v2925_v1 = vld [vmem:[%s3448_s1 + $0x8] sm:$0xff] (!%p189_p2)   ;;  %vm346_vm0 = vcmask (!%p189_p2), 261120  }
   0x6   : > { %192 = sbr.rel (%p189_p2) target bundleno = 806 (0x326), region = 40  ;;  %p217_p3 = scmp.lt.s32.totalorder (!%p189_p2), %s2179_s22, 127  ;;  %2708 = vmatprep.subr.bf16.mxu0 (!%p189_p2), %v2924_v0  ;;  %2912 = vmatprep.subr.bf16.mxu1 (!%p189_p2), %v2924_v0  ;;  %v2926_v2 = vld [vmem:[%s3449_s2] sm:$0xff] (!%p189_p2)   ;;  %v2927_v29 = vld [vmem:[%s3449_s2 + $0x8] sm:$0xff] (!%p189_p2)  }
   0x7   : > { %2709 = vmatpush3.bf16.msra.mxu0 (!%p189_p2), %v2924_v0  ;;  %2914 = vmatpush3.bf16.msra.mxu1 (!%p189_p2), %v2924_v0 }
   0x8   : > { %2710 = vmatprep.subr.bf16.mxu0 (!%p189_p2), %v2925_v1  ;;  %2913 = vmatprep.subr.bf16.mxu1 (!%p189_p2), %v2925_v1 }
   0xb   : > { %2711 = vmatpush3.bf16.msra.mxu0 (!%p189_p2), %v2925_v1  ;;  %2915 = vmatpush3.bf16.msra.mxu1 (!%p189_p2), %v2925_v1 }
   0xc   : > { %2776 = vmatprep.subr.bf16.mxu1 (!%p189_p2), %v2926_v2 }
   0xd   : > { %s3454_s22 = smov (!%p217_p3, %s2179_s22), 127 }
   0xe   : > { %s2180_s27 = sshll.u32 %s3454_s22, 3  ;;  %s2182_s16 = sshll.u32 %s3454_s22, 2 }
   0xf   : > { %s2992_s30 = scalar_lea.vmem %s3447_s0, %s2180_s27  ;;  %s3350_s20 = scalar_lea.vmem %s3452_s5, %s2182_s16 }
  0x10   : > { %v230_v3 = vld [vmem:[%s2992_s30] sm:$0xff]  ;;  %v231_v4 = vld [vmem:[%s2992_s30 + $0x8] sm:$0xff]  ;;  %v232_v5 = vld [vmem:[%s2992_s30 + $0x10] sm:$0xff] }
  0x11   : > { %v294_v6 = vpack.c.bf16 %v231_v4, %v230_v3  ;;  %v233_v7 = vld [vmem:[%s2992_s30 + $0x18] sm:$0xff]  ;;  %v234_v8 = vld [vmem:[%s2992_s30 + $0x20] sm:$0xff]  ;;  %v235_v9 = vld [vmem:[%s2992_s30 + $0x28] sm:$0xff] }
  0x12   : > { %v295_v10 = vpack.c.bf16 %v233_v7, %v232_v5  ;;  %v296_v11 = vpack.c.bf16 %v235_v9, %v234_v8  ;;  %v236_v12 = vld [vmem:[%s2992_s30 + $0x30] sm:$0xff]  ;;  %v237_v13 = vld [vmem:[%s2992_s30 + $0x38] sm:$0xff]  ;;  %v238_v14 = vld [vmem:[%s2992_s30 + $0x40] sm:$0xff] }
  0x13   : > { %2712 = vmatprep.mubr.msk.bf16.mxu0 %vm346_vm0, %v294_v6  ;;  %v239_v15 = vld [vmem:[%s2992_s30 + $0x48] sm:$0xff]  ;;  %v297_v16 = vpack.c.bf16 %v237_v13, %v236_v12  ;;  %v262_v18 = vld [vmem:[%s2992_s30 + $0x100] sm:$0xff]  ;;  %v264_v20 = vld [vmem:[%s2992_s30 + $0x110] sm:$0xff] }
  0x14   : > { %2713 = vmatmul.mubr.msk.bf16.vlgmr.msra.gmra.mrb[0].mxu0 %vm346_vm0, %v295_v10  ;;  %v298_v17 = vpack.c.bf16 %v239_v15, %v238_v14  ;;  %v263_v19 = vld [vmem:[%s2992_s30 + $0x108] sm:$0xff]  ;;  %v265_v21 = vld [vmem:[%s2992_s30 + $0x118] sm:$0xff]  ;;  %v266_v24 = vld [vmem:[%s2992_s30 + $0x120] sm:$0xff] }
  0x15   : > { %2716 = vmatprep.mubr.msk.bf16.mxu0 %vm346_vm0, %v296_v11  ;;  %v310_v22 = vpack.c.bf16 %v263_v19, %v262_v18  ;;  %v311_v23 = vpack.c.bf16 %v265_v21, %v264_v20  ;;  %v267_v25 = vld [vmem:[%s2992_s30 + $0x128] sm:$0xff]  ;;  %v240_v26 = vld [vmem:[%s2992_s30 + $0x50] sm:$0xff]  ;;  %v241_v27 = vld [vmem:[%s2992_s30 + $0x58] sm:$0xff] }
  0x16   : > { %v312_v28 = vpack.c.bf16 %v267_v25, %v266_v24  ;;  %v242_v30 = vld [vmem:[%s2992_s30 + $0x60] sm:$0xff]  ;;  %v243_v31 = vld [vmem:[%s2992_s30 + $0x68] sm:$0xff]  ;;  %v299_v32 = vpack.c.bf16 %v241_v27, %v240_v26  ;;  %v268_v33 = vld [vmem:[%s2992_s30 + $0x130] sm:$0xff] }
  0x17   : > { %2744 = vmatprep.mubr.msk.bf16.mxu1 %vm346_vm0, %v310_v22  ;;  %v269_v34 = vld [vmem:[%s2992_s30 + $0x138] sm:$0xff]  ;;  %v300_v35 = vpack.c.bf16 %v243_v31, %v242_v30  ;;  %v270_v36 = vld [vmem:[%s2992_s30 + $0x140] sm:$0xff]  ;;  %v271_v37 = vld [vmem:[%s2992_s30 + $0x148] sm:$0xff] }
  0x18   : > { %2745 = vmatmul.mubr.msk.bf16.vlgmr.msra.gmra.mrb[0].mxu1 %vm346_vm0, %v311_v23  ;;  %v313_v38 = vpack.c.bf16 %v269_v34, %v268_v33  ;;  %v314_v39 = vpack.c.bf16 %v271_v37, %v270_v36  ;;  %v244_v40 = vld [vmem:[%s2992_s30 + $0x70] sm:$0xff]  ;;  %v245_v41 = vld [vmem:[%s2992_s30 + $0x78] sm:$0xff]  ;;  %v246_v42 = vld [vmem:[%s2992_s30 + $0x80] sm:$0xff]  ;;  %v330_v36 = vlaneseq }
  0x19   : > { %2748 = vmatprep.mubr.msk.bf16.mxu1 %vm346_vm0, %v312_v28  ;;  %2777 = vmatpush3.bf16.msra.mxu1 %v2926_v2  ;;  %v247_v43 = vld [vmem:[%s2992_s30 + $0x88] sm:$0xff]  ;;  %v301_v44 = vpack.c.bf16 %v245_v41, %v244_v40  ;;  %v272_v45 = vld [vmem:[%s2992_s30 + $0x150] sm:$0xff]  ;;  %v273_v46 = vld [vmem:[%s2992_s30 + $0x158] sm:$0xff] }
  0x1a   : > { %2778 = vmatprep.subr.bf16.mxu1 %v2927_v29  ;;  %v302_v47 = vpack.c.bf16 %v247_v43, %v246_v42  ;;  %v274_v48 = vld [vmem:[%s2992_s30 + $0x160] sm:$0xff]  ;;  %v275_v49 = vld [vmem:[%s2992_s30 + $0x168] sm:$0xff]  ;;  %v315_v50 = vpack.c.bf16 %v273_v46, %v272_v45  ;;  %v248_v52 = vld [vmem:[%s2992_s30 + $0x90] sm:$0xff]  ;;  %v3093_v37 = vshrl.u32 %v330_v36, 7 }
  0x1b   : > { %v316_v51 = vpack.c.bf16 %v275_v49, %v274_v48  ;;  %v249_v53 = vld [vmem:[%s2992_s30 + $0x98] sm:$0xff]  ;;  %v250_v54 = vld [vmem:[%s2992_s30 + $0xa0] sm:$0xff]  ;;  %v251_v55 = vld [vmem:[%s2992_s30 + $0xa8] sm:$0xff] }
  0x1c   : > { %2717 = vmatmul.mubr.msk.bf16.gmra.mrb[4].mxu0 %vm346_vm0, %v297_v16  ;;  %v303_v56 = vpack.c.bf16 %v249_v53, %v248_v52  ;;  %v276_v57 = vld [vmem:[%s2992_s30 + $0x170] sm:$0xff]  ;;  %v277_v58 = vld [vmem:[%s2992_s30 + $0x178] sm:$0xff]  ;;  %v304_v59 = vpack.c.bf16 %v251_v55, %v250_v54  ;;  %v278_v60 = vld [vmem:[%s2992_s30 + $0x180] sm:$0xff] }
  0x1d   : > { %2720 = vmatprep.mubr.msk.bf16.mxu0 %vm346_vm0, %v298_v17  ;;  %2779 = vmatpush3.bf16.msra.mxu1 %v2927_v29  ;;  %v279_v61 = vld [vmem:[%s2992_s30 + $0x188] sm:$0xff]  ;;  %v317_v62 = vpack.c.bf16 %v277_v58, %v276_v57  ;;  %v252_v0 = vld [vmem:[%s2992_s30 + $0xb0] sm:$0xff]  ;;  %v253_v1 = vld [vmem:[%s2992_s30 + $0xb8] sm:$0xff] }
  0x1e   : > { %v318_v63 = vpack.c.bf16 %v279_v61, %v278_v60  ;;  %v254_v2 = vld [vmem:[%s2992_s30 + $0xc0] sm:$0xff]  ;;  %v255_v3 = vld [vmem:[%s2992_s30 + $0xc8] sm:$0xff]  ;;  %v305_v4 = vpack.c.bf16 %v253_v1, %v252_v0  ;;  %v280_v5 = vld [vmem:[%s2992_s30 + $0x190] sm:$0xff] }
  0x1f   : > { %v281_v6 = vld [vmem:[%s2992_s30 + $0x198] sm:$0xff]  ;;  %v306_v7 = vpack.c.bf16 %v255_v3, %v254_v2  ;;  %v282_v8 = vld [vmem:[%s2992_s30 + $0x1a0] sm:$0xff]  ;;  %v283_v9 = vld [vmem:[%s2992_s30 + $0x1a8] sm:$0xff] }
  0x20   : > { %2749 = vmatmul.mubr.msk.bf16.gmra.mrb[4].mxu1 %vm346_vm0, %v313_v38  ;;  %v319_v10 = vpack.c.bf16 %v281_v6, %v280_v5  ;;  %v320_v11 = vpack.c.bf16 %v283_v9, %v282_v8  ;;  %v256_v12 = vld [vmem:[%s2992_s30 + $0xd0] sm:$0xff]  ;;  %v257_v13 = vld [vmem:[%s2992_s30 + $0xd8] sm:$0xff]  ;;  %v258_v14 = vld [vmem:[%s2992_s30 + $0xe0] sm:$0xff]  ;;  %v332_v38 = vsub.s32 0, %v3093_v37 }
  0x21   : > { %2752 = vmatprep.mubr.msk.bf16.mxu1 %vm346_vm0, %v314_v39  ;;  %v259_v15 = vld [vmem:[%s2992_s30 + $0xe8] sm:$0xff]  ;;  %v307_v16 = vpack.c.bf16 %v257_v13, %v256_v12  ;;  %v284_v17 = vld [vmem:[%s2992_s30 + $0x1b0] sm:$0xff]  ;;  %v285_v18 = vld [vmem:[%s2992_s30 + $0x1b8] sm:$0xff] }
  0x22   : > { %v308_v19 = vpack.c.bf16 %v259_v15, %v258_v14  ;;  %v286_v20 = vld [vmem:[%s2992_s30 + $0x1c0] sm:$0xff]  ;;  %v287_v21 = vld [vmem:[%s2992_s30 + $0x1c8] sm:$0xff]  ;;  %v321_v22 = vpack.c.bf16 %v285_v18, %v284_v17  ;;  %v260_v24 = vld [vmem:[%s2992_s30 + $0xf0] sm:$0xff] }
  0x23   : > { %v322_v23 = vpack.c.bf16 %v287_v21, %v286_v20  ;;  %v261_v25 = vld [vmem:[%s2992_s30 + $0xf8] sm:$0xff]  ;;  %v288_v27 = vld [vmem:[%s2992_s30 + $0x1d0] sm:$0xff]  ;;  %v290_v29 = vld [vmem:[%s2992_s30 + $0x1e0] sm:$0xff] }
  0x24   : > { %2721 = vmatmul.mubr.msk.bf16.gmra.mrb[8].mxu0 %vm346_vm0, %v299_v32  ;;  %v309_v26 = vpack.c.bf16 %v261_v25, %v260_v24  ;;  %v289_v28 = vld [vmem:[%s2992_s30 + $0x1d8] sm:$0xff]  ;;  %v291_v30 = vld [vmem:[%s2992_s30 + $0x1e8] sm:$0xff]  ;;  %v292_v33 = vld [vmem:[%s2992_s30 + $0x1f0] sm:$0xff] }
  0x25   : > { %2724 = vmatprep.mubr.msk.bf16.mxu0 %vm346_vm0, %v300_v35  ;;  %v323_v31 = vpack.c.bf16 %v289_v28, %v288_v27  ;;  %v324_v32 = vpack.c.bf16 %v291_v30, %v290_v29  ;;  %v293_v34 = vld [vmem:[%s2992_s30 + $0x1f8] sm:$0xff]  ;;  %v3099_v39 = vld [vmem:[%s3451_s4] sm:$0x7]  ;;  %v2929_v49 = vld [vmem:[%s3450_s3 + $0x8] sm:$0xff]  }
  0x26   : > { %v325_v35 = vpack.c.bf16 %v293_v34, %v292_v33  ;;  %v3102_v40 = vrot.slane %v3099_v39, %v332_v38  ;;  %v2928_v48 = vld [vmem:[%s3450_s3] sm:$0xff]  }
  0x27   : > { %2844 = vmatprep.subr.bf16.mxu0 %v2928_v48 }
  0x28   : > { %2753 = vmatmul.mubr.msk.bf16.gmra.mrb[8].mxu1 %vm346_vm0, %v315_v50  ;;  %2845 = vmatpush3.bf16.msra.mxu0 %v2928_v48 }
  0x29   : > { %2756 = vmatprep.mubr.msk.bf16.mxu1 %vm346_vm0, %v316_v51  ;;  %2846 = vmatprep.subr.bf16.mxu0 %v2929_v49 }
  0x2c   : > { %2725 = vmatmul.mubr.msk.bf16.gmra.mrb[12].mxu0 %vm346_vm0, %v301_v44 }
  0x2d   : > { %2728 = vmatprep.mubr.msk.bf16.mxu0 %vm346_vm0, %v302_v47  ;;  %2847 = vmatpush3.bf16.msra.mxu0 %v2929_v49 }
  0x30   : > { %2757 = vmatmul.mubr.msk.bf16.gmra.mrb[12].mxu1 %vm346_vm0, %v317_v62 }
  0x31   : > { %2760 = vmatprep.mubr.msk.bf16.mxu1 %vm346_vm0, %v318_v63 }
  0x34   : > { %2729 = vmatmul.mubr.msk.bf16.gmra.mrb[16].mxu0 %vm346_vm0, %v303_v56 }
  0x35   : > { %2732 = vmatprep.mubr.msk.bf16.mxu0 %vm346_vm0, %v304_v59 }
  0x38   : > { %2761 = vmatmul.mubr.msk.bf16.gmra.mrb[16].mxu1 %vm346_vm0, %v319_v10 }
  0x39   : > { %2764 = vmatprep.mubr.msk.bf16.mxu1 %vm346_vm0, %v320_v11 }
  0x3c   : > { %2733 = vmatmul.mubr.msk.bf16.gmra.mrb[20].mxu0 %vm346_vm0, %v305_v4 }
  0x3d   : > { %2736 = vmatprep.mubr.msk.bf16.mxu0 %vm346_vm0, %v306_v7 }
  0x40   : > { %2765 = vmatmul.mubr.msk.bf16.gmra.mrb[20].mxu1 %vm346_vm0, %v321_v22 }
  0x41   : > { %2768 = vmatprep.mubr.msk.bf16.mxu1 %vm346_vm0, %v322_v23 }
  0x44   : > { %2737 = vmatmul.mubr.msk.bf16.gmra.mrb[24].mxu0 %vm346_vm0, %v307_v16 }
  0x45   : > { %2740 = vmatprep.mubr.msk.bf16.mxu0 %vm346_vm0, %v308_v19 }
  0x48   : > { %2769 = vmatmul.mubr.msk.bf16.gmra.mrb[24].mxu1 %vm346_vm0, %v323_v31 }
  0x49   : > { %2772 = vmatprep.mubr.msk.bf16.mxu1 %vm346_vm0, %v324_v32 }
  0x4c   : > { %2741 = vmatmul.mubr.msk.bf16.gmra.mrb[28].mxu0 %vm346_vm0, %v309_v26 }
  0x50   : > { %2773 = vmatmul.mubr.msk.bf16.gmra.mrb[28].mxu1 %vm346_vm0, %v325_v35 }
  0xe7   : > { %v2714_v41 = vpop.f32.mrb[0].mxu0 }
  0xe8   : > { %v486_v42 = vadd.f32 %v2714_v41, %v3102_v40  ;;  %v477_v43 = vpop.f32.mrb[1].mxu0 }
  0xe9   : > { %v478_v44 = vadd.f32 %v477_v43, %v3102_v40  ;;  %v2715_v45 = vpop.f32.mrb[2].mxu0 }
  0xea   : > { %v489_v46 = vadd.f32 %v2715_v45, %v3102_v40  ;;  %v480_v47 = vpop.f32.mrb[3].mxu0  ;;  %v734_v51 = vmax.f32 %v486_v42, 0.0 }
  0xeb   : > { %v481_v50 = vadd.f32 %v480_v47, %v3102_v40  ;;  %v732_v53 = vmax.f32 %v478_v44, 0.0  ;;  %v2746_v0 = vpop.f32.mrb[0].mxu1 }
  0xec   : > { %v735_v52 = vmax.f32 %v489_v46, 0.0  ;;  %v614_v2 = vadd.f32 %v2746_v0, %v3102_v40  ;;  %v605_v3 = vpop.f32.mrb[1].mxu1 }
  0xed   : > { %v733_v54 = vmax.f32 %v481_v50, 0.0  ;;  %v606_v6 = vadd.f32 %v605_v3, %v3102_v40  ;;  %v2747_v7 = vpop.f32.mrb[2].mxu1 }
  0xee   : > { %v797_v55 = vpack.c.bf16 %v735_v52, %v734_v51  ;;  %v766_v10 = vmax.f32 %v614_v2, 0.0  ;;  %v617_v11 = vadd.f32 %v2747_v7, %v3102_v40  ;;  %v608_v12 = vpop.f32.mrb[3].mxu1 }
  0xef   : > { %v796_v56 = vpack.c.bf16 %v733_v54, %v732_v53  ;;  %v2718_v57 = vpop.f32.mrb[4].mxu0  ;;  %v764_v14 = vmax.f32 %v606_v6, 0.0  ;;  %v609_v15 = vadd.f32 %v608_v12, %v3102_v40 }
  0xf0   : > { %v502_v58 = vadd.f32 %v2718_v57, %v3102_v40  ;;  %v493_v59 = vpop.f32.mrb[5].mxu0  ;;  %v767_v18 = vmax.f32 %v617_v11, 0.0 }
  0xf1   : > { %v494_v60 = vadd.f32 %v493_v59, %v3102_v40  ;;  %v2719_v61 = vpop.f32.mrb[6].mxu0  ;;  %2780 = vmatprep.mubr.msk.bf16.mxu1 %vm346_vm0, %v796_v56  ;;  %v765_v21 = vmax.f32 %v609_v15, 0.0 }
  0xf2   : > { %v505_v62 = vadd.f32 %v2719_v61, %v3102_v40  ;;  %v496_v63 = vpop.f32.mrb[7].mxu0  ;;  %2781 = vmatmul.mubr.msk.bf16.vlgmr.msra.gmra.mrb[32].mxu1 %vm346_vm0, %v797_v55  ;;  %v738_v4 = vmax.f32 %v502_v58, 0.0  ;;  %v3127_v24 = vpack.c.bf16 %v767_v18, %v766_v10 }
  0xf3   : > { %v497_v1 = vadd.f32 %v496_v63, %v3102_v40  ;;  %v736_v8 = vmax.f32 %v494_v60, 0.0  ;;  %v3131_v27 = vpack.c.bf16 %v765_v21, %v764_v14  ;;  %v2750_v28 = vpop.f32.mrb[4].mxu1 }
  0xf4   : > { %v739_v5 = vmax.f32 %v505_v62, 0.0  ;;  %v630_v30 = vadd.f32 %v2750_v28, %v3102_v40  ;;  %v621_v31 = vpop.f32.mrb[5].mxu1 }
  0xf5   : > { %v737_v9 = vmax.f32 %v497_v1, 0.0  ;;  %v622_v34 = vadd.f32 %v621_v31, %v3102_v40  ;;  %v2751_v35 = vpop.f32.mrb[6].mxu1 }
  0xf6   : > { %v799_v13 = vpack.c.bf16 %v739_v5, %v738_v4  ;;  %v770_v41 = vmax.f32 %v630_v30, 0.0  ;;  %v633_v42 = vadd.f32 %v2751_v35, %v3102_v40  ;;  %v624_v43 = vpop.f32.mrb[7].mxu1 }
  0xf7   : > { %v798_v16 = vpack.c.bf16 %v737_v9, %v736_v8  ;;  %v2722_v17 = vpop.f32.mrb[8].mxu0  ;;  %v768_v45 = vmax.f32 %v622_v34, 0.0  ;;  %v625_v46 = vadd.f32 %v624_v43, %v3102_v40 }
  0xf8   : > { %v518_v19 = vadd.f32 %v2722_v17, %v3102_v40  ;;  %v509_v20 = vpop.f32.mrb[9].mxu0  ;;  %v771_v49 = vmax.f32 %v633_v42, 0.0 }
  0xf9   : > { %v510_v22 = vadd.f32 %v509_v20, %v3102_v40  ;;  %v2723_v23 = vpop.f32.mrb[10].mxu0  ;;  %2784 = vmatprep.mubr.msk.bf16.mxu1 %vm346_vm0, %v798_v16  ;;  %v769_v52 = vmax.f32 %v625_v46, 0.0 }
  0xfa   : > { %v521_v25 = vadd.f32 %v2723_v23, %v3102_v40  ;;  %v512_v26 = vpop.f32.mrb[11].mxu0  ;;  %2785 = vmatmul.mubr.msk.bf16.gmra.mrb[36].mxu1 %vm346_vm0, %v799_v13  ;;  %v742_v32 = vmax.f32 %v518_v19, 0.0  ;;  %v3141_v55 = vpack.c.bf16 %v771_v49, %v770_v41 }
  0xfb   : > { %v513_v29 = vadd.f32 %v512_v26, %v3102_v40  ;;  %v740_v36 = vmax.f32 %v510_v22, 0.0  ;;  %v3145_v58 = vpack.c.bf16 %v769_v52, %v768_v45  ;;  %v2754_v59 = vpop.f32.mrb[8].mxu1 }
  0xfc   : > { %v743_v33 = vmax.f32 %v521_v25, 0.0  ;;  %v646_v61 = vadd.f32 %v2754_v59, %v3102_v40  ;;  %v637_v62 = vpop.f32.mrb[9].mxu1 }
  0xfd   : > { %v741_v38 = vmax.f32 %v513_v29, 0.0  ;;  %v638_v1 = vadd.f32 %v637_v62, %v3102_v40  ;;  %v2755_v2 = vpop.f32.mrb[10].mxu1 }
  0xfe   : > { %v801_v44 = vpack.c.bf16 %v743_v33, %v742_v32  ;;  %v774_v5 = vmax.f32 %v646_v61, 0.0  ;;  %v649_v6 = vadd.f32 %v2755_v2, %v3102_v40  ;;  %v640_v7 = vpop.f32.mrb[11].mxu1 }
  0xff   : > { %v800_v47 = vpack.c.bf16 %v741_v38, %v740_v36  ;;  %v2726_v48 = vpop.f32.mrb[12].mxu0  ;;  %v772_v9 = vmax.f32 %v638_v1, 0.0  ;;  %v641_v10 = vadd.f32 %v640_v7, %v3102_v40 }
 0x100   : > { %v534_v50 = vadd.f32 %v2726_v48, %v3102_v40  ;;  %v525_v51 = vpop.f32.mrb[13].mxu0  ;;  %v775_v13 = vmax.f32 %v649_v6, 0.0 }
 0x101   : > { %v526_v53 = vadd.f32 %v525_v51, %v3102_v40  ;;  %v2727_v54 = vpop.f32.mrb[14].mxu0  ;;  %2788 = vmatprep.mubr.msk.bf16.mxu1 %vm346_vm0, %v800_v47  ;;  %v773_v16 = vmax.f32 %v641_v10, 0.0 }
 0x102   : > { %v537_v56 = vadd.f32 %v2727_v54, %v3102_v40  ;;  %v528_v57 = vpop.f32.mrb[15].mxu0  ;;  %2789 = vmatmul.mubr.msk.bf16.gmra.mrb[40].mxu1 %vm346_vm0, %v801_v44  ;;  %v746_v63 = vmax.f32 %v534_v50, 0.0  ;;  %v3155_v19 = vpack.c.bf16 %v775_v13, %v774_v5 }
 0x103   : > { %v529_v60 = vadd.f32 %v528_v57, %v3102_v40  ;;  %v744_v3 = vmax.f32 %v526_v53, 0.0  ;;  %v3159_v22 = vpack.c.bf16 %v773_v16, %v772_v9  ;;  %v2758_v23 = vpop.f32.mrb[12].mxu1 }
 0x104   : > { %v747_v0 = vmax.f32 %v537_v56, 0.0  ;;  %v662_v26 = vadd.f32 %v2758_v23, %v3102_v40  ;;  %v653_v28 = vpop.f32.mrb[13].mxu1 }
 0x105   : > { %v745_v4 = vmax.f32 %v529_v60, 0.0  ;;  %v654_v31 = vadd.f32 %v653_v28, %v3102_v40  ;;  %v2759_v32 = vpop.f32.mrb[14].mxu1 }
 0x106   : > { %v803_v8 = vpack.c.bf16 %v747_v0, %v746_v63  ;;  %v778_v35 = vmax.f32 %v662_v26, 0.0  ;;  %v665_v36 = vadd.f32 %v2759_v32, %v3102_v40  ;;  %v656_v38 = vpop.f32.mrb[15].mxu1 }
 0x107   : > { %v802_v11 = vpack.c.bf16 %v745_v4, %v744_v3  ;;  %v2730_v12 = vpop.f32.mrb[16].mxu0  ;;  %v776_v42 = vmax.f32 %v654_v31, 0.0  ;;  %v657_v43 = vadd.f32 %v656_v38, %v3102_v40 }
 0x108   : > { %v550_v14 = vadd.f32 %v2730_v12, %v3102_v40  ;;  %v541_v15 = vpop.f32.mrb[17].mxu0  ;;  %v779_v46 = vmax.f32 %v665_v36, 0.0 }
 0x109   : > { %v542_v17 = vadd.f32 %v541_v15, %v3102_v40  ;;  %v2731_v18 = vpop.f32.mrb[18].mxu0  ;;  %2792 = vmatprep.mubr.msk.bf16.mxu1 %vm346_vm0, %v802_v11  ;;  %v777_v49 = vmax.f32 %v657_v43, 0.0 }
 0x10a   : > { %v553_v20 = vadd.f32 %v2731_v18, %v3102_v40  ;;  %v544_v21 = vpop.f32.mrb[19].mxu0  ;;  %2793 = vmatmul.mubr.msk.bf16.gmra.mrb[44].mxu1 %vm346_vm0, %v803_v8  ;;  %v750_v29 = vmax.f32 %v550_v14, 0.0  ;;  %v3169_v52 = vpack.c.bf16 %v779_v46, %v778_v35 }
 0x10b   : > { %v545_v25 = vadd.f32 %v544_v21, %v3102_v40  ;;  %v748_v33 = vmax.f32 %v542_v17, 0.0  ;;  %v3173_v56 = vpack.c.bf16 %v777_v49, %v776_v42  ;;  %v2762_v57 = vpop.f32.mrb[16].mxu1 }
 0x10c   : > { %v751_v30 = vmax.f32 %v553_v20, 0.0  ;;  %v678_v60 = vadd.f32 %v2762_v57, %v3102_v40  ;;  %v669_v61 = vpop.f32.mrb[17].mxu1 }
 0x10d   : > { %v749_v34 = vmax.f32 %v545_v25, 0.0  ;;  %v670_v0 = vadd.f32 %v669_v61, %v3102_v40  ;;  %v2763_v1 = vpop.f32.mrb[18].mxu1 }
 0x10e   : > { %v805_v41 = vpack.c.bf16 %v751_v30, %v750_v29  ;;  %v782_v4 = vmax.f32 %v678_v60, 0.0  ;;  %v681_v5 = vadd.f32 %v2763_v1, %v3102_v40  ;;  %v672_v6 = vpop.f32.mrb[19].mxu1 }
 0x10f   : > { %v804_v44 = vpack.c.bf16 %v749_v34, %v748_v33  ;;  %v2734_v45 = vpop.f32.mrb[20].mxu0  ;;  %v780_v8 = vmax.f32 %v670_v0, 0.0  ;;  %v673_v9 = vadd.f32 %v672_v6, %v3102_v40 }
 0x110   : > { %v566_v47 = vadd.f32 %v2734_v45, %v3102_v40  ;;  %v557_v48 = vpop.f32.mrb[21].mxu0  ;;  %v783_v12 = vmax.f32 %v681_v5, 0.0 }
 0x111   : > { %v558_v50 = vadd.f32 %v557_v48, %v3102_v40  ;;  %v2735_v51 = vpop.f32.mrb[22].mxu0  ;;  %2796 = vmatprep.mubr.msk.bf16.mxu1 %vm346_vm0, %v804_v44  ;;  %v781_v15 = vmax.f32 %v673_v9, 0.0 }
 0x112   : > { %v569_v53 = vadd.f32 %v2735_v51, %v3102_v40  ;;  %v560_v54 = vpop.f32.mrb[23].mxu0  ;;  %2797 = vmatmul.mubr.msk.bf16.gmra.mrb[48].mxu1 %vm346_vm0, %v805_v41  ;;  %v754_v62 = vmax.f32 %v566_v47, 0.0  ;;  %v3183_v18 = vpack.c.bf16 %v783_v12, %v782_v4 }
 0x113   : > { %v561_v59 = vadd.f32 %v560_v54, %v3102_v40  ;;  %v752_v2 = vmax.f32 %v558_v50, 0.0  ;;  %v3187_v23 = vpack.c.bf16 %v781_v15, %v780_v8  ;;  %v2766_v25 = vpop.f32.mrb[20].mxu1 }
 0x114   : > { %v755_v63 = vmax.f32 %v569_v53, 0.0  ;;  %v694_v28 = vadd.f32 %v2766_v25, %v3102_v40  ;;  %v685_v29 = vpop.f32.mrb[21].mxu1 }
 0x115   : > { %v753_v3 = vmax.f32 %v561_v59, 0.0  ;;  %v686_v32 = vadd.f32 %v685_v29, %v3102_v40  ;;  %v2767_v33 = vpop.f32.mrb[22].mxu1 }
 0x116   : > { %v807_v7 = vpack.c.bf16 %v755_v63, %v754_v62  ;;  %v786_v36 = vmax.f32 %v694_v28, 0.0  ;;  %v697_v38 = vadd.f32 %v2767_v33, %v3102_v40  ;;  %v688_v41 = vpop.f32.mrb[23].mxu1 }
 0x117   : > { %v806_v10 = vpack.c.bf16 %v753_v3, %v752_v2  ;;  %v2738_v11 = vpop.f32.mrb[24].mxu0  ;;  %v784_v43 = vmax.f32 %v686_v32, 0.0  ;;  %v689_v44 = vadd.f32 %v688_v41, %v3102_v40 }
 0x118   : > { %v582_v13 = vadd.f32 %v2738_v11, %v3102_v40  ;;  %v573_v14 = vpop.f32.mrb[25].mxu0  ;;  %v787_v47 = vmax.f32 %v697_v38, 0.0 }
 0x119   : > { %v574_v16 = vadd.f32 %v573_v14, %v3102_v40  ;;  %v2739_v17 = vpop.f32.mrb[26].mxu0  ;;  %2800 = vmatprep.mubr.msk.bf16.mxu1 %vm346_vm0, %v806_v10  ;;  %v785_v50 = vmax.f32 %v689_v44, 0.0 }
 0x11a   : > { %v585_v20 = vadd.f32 %v2739_v17, %v3102_v40  ;;  %v576_v21 = vpop.f32.mrb[27].mxu0  ;;  %2801 = vmatmul.mubr.msk.bf16.gmra.mrb[52].mxu1 %vm346_vm0, %v807_v7  ;;  %v758_v30 = vmax.f32 %v582_v13, 0.0  ;;  %v823_v54 = vpack.c.bf16 %v787_v47, %v786_v36 }
 0x11b   : > { %v577_v26 = vadd.f32 %v576_v21, %v3102_v40  ;;  %v756_v34 = vmax.f32 %v574_v16, 0.0  ;;  %v822_v60 = vpack.c.bf16 %v785_v50, %v784_v43  ;;  %v2770_v61 = vpop.f32.mrb[24].mxu1 }
 0x11c   : > { %v759_v31 = vmax.f32 %v585_v20, 0.0  ;;  %v710_v63 = vadd.f32 %v2770_v61, %v3102_v40  ;;  %v701_v0 = vpop.f32.mrb[25].mxu1 }
 0x11d   : > { %v757_v35 = vmax.f32 %v577_v26, 0.0  ;;  %v702_v3 = vadd.f32 %v701_v0, %v3102_v40  ;;  %v2771_v4 = vpop.f32.mrb[26].mxu1 }
 0x11e   : > { %v809_v42 = vpack.c.bf16 %v759_v31, %v758_v30  ;;  %v790_v7 = vmax.f32 %v710_v63, 0.0  ;;  %v713_v8 = vadd.f32 %v2771_v4, %v3102_v40  ;;  %v704_v9 = vpop.f32.mrb[27].mxu1 }
 0x11f   : > { %v808_v45 = vpack.c.bf16 %v757_v35, %v756_v34  ;;  %v2742_v46 = vpop.f32.mrb[28].mxu0  ;;  %v788_v11 = vmax.f32 %v702_v3, 0.0  ;;  %v705_v12 = vadd.f32 %v704_v9, %v3102_v40 }
 0x120   : > { %v598_v48 = vadd.f32 %v2742_v46, %v3102_v40  ;;  %v589_v49 = vpop.f32.mrb[29].mxu0  ;;  %v791_v14 = vmax.f32 %v713_v8, 0.0 }
 0x121   : > { %v590_v51 = vadd.f32 %v589_v49, %v3102_v40  ;;  %v2743_v53 = vpop.f32.mrb[30].mxu0  ;;  %2804 = vmatprep.mubr.msk.bf16.mxu1 %vm346_vm0, %v808_v45  ;;  %v789_v15 = vmax.f32 %v705_v12, 0.0 }
 0x122   : > { %v601_v57 = vadd.f32 %v2743_v53, %v3102_v40  ;;  %v592_v59 = vpop.f32.mrb[31].mxu0  ;;  %2805 = vmatmul.mubr.msk.bf16.gmra.mrb[56].mxu1 %vm346_vm0, %v809_v42  ;;  %v762_v1 = vmax.f32 %v598_v48, 0.0  ;;  %v825_v16 = vpack.c.bf16 %v791_v14, %v790_v7 }
 0x123   : > { %v593_v62 = vadd.f32 %v592_v59, %v3102_v40  ;;  %v760_v5 = vmax.f32 %v590_v51, 0.0  ;;  %v824_v17 = vpack.c.bf16 %v789_v15, %v788_v11  ;;  %v2774_v20 = vpop.f32.mrb[28].mxu1 }
 0x124   : > { %v763_v2 = vmax.f32 %v601_v57, 0.0  ;;  %v726_v21 = vadd.f32 %v2774_v20, %v3102_v40  ;;  %v717_v25 = vpop.f32.mrb[29].mxu1 }
 0x125   : > { %v761_v6 = vmax.f32 %v593_v62, 0.0  ;;  %v718_v26 = vadd.f32 %v717_v25, %v3102_v40  ;;  %v2775_v28 = vpop.f32.mrb[30].mxu1 }
 0x126   : > { %v811_v10 = vpack.c.bf16 %v763_v2, %v762_v1  ;;  %v794_v29 = vmax.f32 %v726_v21, 0.0  ;;  %v729_v30 = vadd.f32 %v2775_v28, %v3102_v40  ;;  %v720_v31 = vpop.f32.mrb[31].mxu1 }
 0x127   : > { %v810_v13 = vpack.c.bf16 %v761_v6, %v760_v5  ;;  %v792_v32 = vmax.f32 %v718_v26, 0.0  ;;  %v721_v33 = vadd.f32 %v720_v31, %v3102_v40  ;;  %v834_v40 = vsub.s32 1, %v3093_v37 }
 0x128   : > { %v795_v34 = vmax.f32 %v729_v30, 0.0 }
 0x129   : > { %2808 = vmatprep.mubr.msk.bf16.mxu1 %vm346_vm0, %v810_v13  ;;  %v793_v35 = vmax.f32 %v721_v33, 0.0 }
 0x12a   : > { %2809 = vmatmul.mubr.msk.bf16.gmra.mrb[60].mxu1 %vm346_vm0, %v811_v10  ;;  %v827_v36 = vpack.c.bf16 %v795_v34, %v794_v29 }
 0x12b   : > { %2812 = vmatprep.mubr.msk.bf16.mxu1 %vm346_vm0, %v3131_v27  ;;  %v826_v27 = vpack.c.bf16 %v793_v35, %v792_v32 }
 0x132   : > { %2813 = vmatmul.mubr.msk.bf16.gmra.mrb[64].mxu1 %vm346_vm0, %v3127_v24  ;;  %v3238_v24 = vrot.slane %v3099_v39, %v834_v40 }
 0x133   : > { %2816 = vmatprep.mubr.msk.bf16.mxu1 %vm346_vm0, %v3145_v58 }
 0x13a   : > { %2817 = vmatmul.mubr.msk.bf16.gmra.mrb[68].mxu1 %vm346_vm0, %v3141_v55 }
 0x13b   : > { %2820 = vmatprep.mubr.msk.bf16.mxu1 %vm346_vm0, %v3159_v22 }
 0x142   : > { %2821 = vmatmul.mubr.msk.bf16.gmra.mrb[72].mxu1 %vm346_vm0, %v3155_v19 }
 0x143   : > { %2824 = vmatprep.mubr.msk.bf16.mxu1 %vm346_vm0, %v3173_v56 }
 0x14a   : > { %2825 = vmatmul.mubr.msk.bf16.gmra.mrb[76].mxu1 %vm346_vm0, %v3169_v52 }
 0x14b   : > { %2828 = vmatprep.mubr.msk.bf16.mxu1 %vm346_vm0, %v3187_v23 }
 0x152   : > { %2829 = vmatmul.mubr.msk.bf16.gmra.mrb[80].mxu1 %vm346_vm0, %v3183_v18 }
 0x153   : > { %2832 = vmatprep.mubr.msk.bf16.mxu1 %vm346_vm0, %v822_v60 }
 0x15a   : > { %2833 = vmatmul.mubr.msk.bf16.gmra.mrb[84].mxu1 %vm346_vm0, %v823_v54 }
 0x15b   : > { %2836 = vmatprep.mubr.msk.bf16.mxu1 %vm346_vm0, %v824_v17 }
 0x162   : > { %2837 = vmatmul.mubr.msk.bf16.gmra.mrb[88].mxu1 %vm346_vm0, %v825_v16 }
 0x163   : > { %2840 = vmatprep.mubr.msk.bf16.mxu1 %vm346_vm0, %v826_v27 }
 0x16a   : > { %2841 = vmatmul.mubr.msk.bf16.gmra.mrb[92].mxu1 %vm346_vm0, %v827_v36 }
 0x1c5   : > { %v2782_v55 = vpop.f32.mrb[32].mxu1 }
 0x1c6   : > { %v987_v58 = vadd.f32 %v2782_v55, %v3238_v24  ;;  %v978_v19 = vpop.f32.mrb[33].mxu1 }
 0x1c7   : > { %v979_v22 = vadd.f32 %v978_v19, %v3238_v24  ;;  %v2783_v52 = vpop.f32.mrb[34].mxu1 }
 0x1c8   : > { %v990_v56 = vadd.f32 %v2783_v52, %v3238_v24  ;;  %v981_v18 = vpop.f32.mrb[35].mxu1  ;;  %v1235_v38 = vmax.f32 %v987_v58, 0.0 }
 0x1c9   : > { %v982_v23 = vadd.f32 %v981_v18, %v3238_v24  ;;  %v1233_v42 = vmax.f32 %v979_v22, 0.0 }
 0x1ca   : > { %v1236_v41 = vmax.f32 %v990_v56, 0.0 }
 0x1cb   : > { %v1234_v43 = vmax.f32 %v982_v23, 0.0 }
 0x1cc   : > { %v1298_v44 = vpack.c.bf16 %v1236_v41, %v1235_v38 }
 0x1cd   : > { %v1297_v45 = vpack.c.bf16 %v1234_v43, %v1233_v42  ;;  %v2786_v39 = vpop.f32.mrb[36].mxu1 }
 0x1ce   : > { %v1003_v46 = vadd.f32 %v2786_v39, %v3238_v24  ;;  %v994_v47 = vpop.f32.mrb[37].mxu1 }
 0x1cf   : > { %v995_v48 = vadd.f32 %v994_v47, %v3238_v24  ;;  %v2787_v49 = vpop.f32.mrb[38].mxu1  ;;  %2848 = vmatprep.mubr.msk.bf16.mxu0 %vm346_vm0, %v1297_v45 }
 0x1d0   : > { %v1006_v50 = vadd.f32 %v2787_v49, %v3238_v24  ;;  %v997_v51 = vpop.f32.mrb[39].mxu1  ;;  %2849 = vmatmul.mubr.msk.bf16.vlgmr.msra.gmra.mrb[32].mxu0 %vm346_vm0, %v1298_v44  ;;  %v1239_v54 = vmax.f32 %v1003_v46, 0.0 }
 0x1d1   : > { %v998_v53 = vadd.f32 %v997_v51, %v3238_v24  ;;  %v1237_v59 = vmax.f32 %v995_v48, 0.0 }
 0x1d2   : > { %v1240_v57 = vmax.f32 %v1006_v50, 0.0 }
 0x1d3   : > { %v1238_v60 = vmax.f32 %v998_v53, 0.0 }
 0x1d4   : > { %v1300_v61 = vpack.c.bf16 %v1240_v57, %v1239_v54 }
 0x1d5   : > { %v1299_v62 = vpack.c.bf16 %v1238_v60, %v1237_v59  ;;  %v2790_v63 = vpop.f32.mrb[40].mxu1 }
 0x1d6   : > { %v1019_v0 = vadd.f32 %v2790_v63, %v3238_v24  ;;  %v1010_v1 = vpop.f32.mrb[41].mxu1 }
 0x1d7   : > { %v1011_v2 = vadd.f32 %v1010_v1, %v3238_v24  ;;  %v2791_v3 = vpop.f32.mrb[42].mxu1  ;;  %2852 = vmatprep.mubr.msk.bf16.mxu0 %vm346_vm0, %v1299_v62 }
 0x1d8   : > { %v1022_v4 = vadd.f32 %v2791_v3, %v3238_v24  ;;  %v1013_v5 = vpop.f32.mrb[43].mxu1  ;;  %2853 = vmatmul.mubr.msk.bf16.gmra.mrb[36].mxu0 %vm346_vm0, %v1300_v61  ;;  %v1243_v7 = vmax.f32 %v1019_v0, 0.0 }
 0x1d9   : > { %v1014_v6 = vadd.f32 %v1013_v5, %v3238_v24  ;;  %v1241_v9 = vmax.f32 %v1011_v2, 0.0 }
 0x1da   : > { %v1244_v8 = vmax.f32 %v1022_v4, 0.0 }
 0x1db   : > { %v1242_v10 = vmax.f32 %v1014_v6, 0.0 }
 0x1dc   : > { %v1302_v11 = vpack.c.bf16 %v1244_v8, %v1243_v7 }
 0x1dd   : > { %v1301_v12 = vpack.c.bf16 %v1242_v10, %v1241_v9  ;;  %v2794_v13 = vpop.f32.mrb[44].mxu1 }
 0x1de   : > { %v1035_v14 = vadd.f32 %v2794_v13, %v3238_v24  ;;  %v1026_v15 = vpop.f32.mrb[45].mxu1 }
 0x1df   : > { %v1027_v16 = vadd.f32 %v1026_v15, %v3238_v24  ;;  %v2795_v17 = vpop.f32.mrb[46].mxu1  ;;  %2856 = vmatprep.mubr.msk.bf16.mxu0 %vm346_vm0, %v1301_v12 }
 0x1e0   : > { %v1038_v20 = vadd.f32 %v2795_v17, %v3238_v24  ;;  %v1029_v21 = vpop.f32.mrb[47].mxu1  ;;  %2857 = vmatmul.mubr.msk.bf16.gmra.mrb[40].mxu0 %vm346_vm0, %v1302_v11  ;;  %v1247_v26 = vmax.f32 %v1035_v14, 0.0 }
 0x1e1   : > { %v1030_v25 = vadd.f32 %v1029_v21, %v3238_v24  ;;  %v1245_v29 = vmax.f32 %v1027_v16, 0.0 }
 0x1e2   : > { %v1248_v28 = vmax.f32 %v1038_v20, 0.0 }
 0x1e3   : > { %v1246_v30 = vmax.f32 %v1030_v25, 0.0 }
 0x1e4   : > { %v1304_v31 = vpack.c.bf16 %v1248_v28, %v1247_v26 }
 0x1e5   : > { %v1303_v32 = vpack.c.bf16 %v1246_v30, %v1245_v29  ;;  %v2798_v33 = vpop.f32.mrb[48].mxu1 }
 0x1e6   : > { %v1051_v34 = vadd.f32 %v2798_v33, %v3238_v24  ;;  %v1042_v35 = vpop.f32.mrb[49].mxu1 }
 0x1e7   : > { %v1043_v36 = vadd.f32 %v1042_v35, %v3238_v24  ;;  %v2799_v27 = vpop.f32.mrb[50].mxu1  ;;  %2860 = vmatprep.mubr.msk.bf16.mxu0 %vm346_vm0, %v1303_v32 }
 0x1e8   : > { %v1054_v40 = vadd.f32 %v2799_v27, %v3238_v24  ;;  %v1045_v55 = vpop.f32.mrb[51].mxu1  ;;  %2861 = vmatmul.mubr.msk.bf16.gmra.mrb[44].mxu0 %vm346_vm0, %v1304_v31  ;;  %v1251_v19 = vmax.f32 %v1051_v34, 0.0 }
 0x1e9   : > { %v1046_v58 = vadd.f32 %v1045_v55, %v3238_v24  ;;  %v1249_v52 = vmax.f32 %v1043_v36, 0.0 }
 0x1ea   : > { %v1252_v22 = vmax.f32 %v1054_v40, 0.0 }
 0x1eb   : > { %v1250_v56 = vmax.f32 %v1046_v58, 0.0 }
 0x1ec   : > { %v1306_v18 = vpack.c.bf16 %v1252_v22, %v1251_v19 }
 0x1ed   : > { %v1305_v23 = vpack.c.bf16 %v1250_v56, %v1249_v52  ;;  %v2802_v38 = vpop.f32.mrb[52].mxu1 }
 0x1ee   : > { %v1067_v41 = vadd.f32 %v2802_v38, %v3238_v24  ;;  %v1058_v42 = vpop.f32.mrb[53].mxu1 }
 0x1ef   : > { %v1059_v43 = vadd.f32 %v1058_v42, %v3238_v24  ;;  %v2803_v44 = vpop.f32.mrb[54].mxu1  ;;  %2864 = vmatprep.mubr.msk.bf16.mxu0 %vm346_vm0, %v1305_v23 }
 0x1f0   : > { %v1070_v45 = vadd.f32 %v2803_v44, %v3238_v24  ;;  %v1061_v39 = vpop.f32.mrb[55].mxu1  ;;  %2865 = vmatmul.mubr.msk.bf16.gmra.mrb[48].mxu0 %vm346_vm0, %v1306_v18  ;;  %v1255_v47 = vmax.f32 %v1067_v41, 0.0 }
 0x1f1   : > { %v1062_v46 = vadd.f32 %v1061_v39, %v3238_v24  ;;  %v1253_v49 = vmax.f32 %v1059_v43, 0.0 }
 0x1f2   : > { %v1256_v48 = vmax.f32 %v1070_v45, 0.0 }
 0x1f3   : > { %v1254_v50 = vmax.f32 %v1062_v46, 0.0 }
 0x1f4   : > { %v1308_v51 = vpack.c.bf16 %v1256_v48, %v1255_v47 }
 0x1f5   : > { %v1307_v53 = vpack.c.bf16 %v1254_v50, %v1253_v49  ;;  %v2806_v54 = vpop.f32.mrb[56].mxu1 }
 0x1f6   : > { %v1083_v57 = vadd.f32 %v2806_v54, %v3238_v24  ;;  %v1074_v59 = vpop.f32.mrb[57].mxu1 }
 0x1f7   : > { %v1075_v60 = vadd.f32 %v1074_v59, %v3238_v24  ;;  %v2807_v61 = vpop.f32.mrb[58].mxu1  ;;  %2868 = vmatprep.mubr.msk.bf16.mxu0 %vm346_vm0, %v1307_v53 }
 0x1f8   : > { %v1086_v62 = vadd.f32 %v2807_v61, %v3238_v24  ;;  %v1077_v63 = vpop.f32.mrb[59].mxu1  ;;  %2869 = vmatmul.mubr.msk.bf16.gmra.mrb[52].mxu0 %vm346_vm0, %v1308_v51  ;;  %v1259_v1 = vmax.f32 %v1083_v57, 0.0 }
 0x1f9   : > { %v1078_v0 = vadd.f32 %v1077_v63, %v3238_v24  ;;  %v1257_v3 = vmax.f32 %v1075_v60, 0.0 }
 0x1fa   : > { %v1260_v2 = vmax.f32 %v1086_v62, 0.0 }
 0x1fb   : > { %v1258_v4 = vmax.f32 %v1078_v0, 0.0 }
 0x1fc   : > { %v1310_v5 = vpack.c.bf16 %v1260_v2, %v1259_v1 }
 0x1fd   : > { %v1309_v6 = vpack.c.bf16 %v1258_v4, %v1257_v3  ;;  %v2810_v7 = vpop.f32.mrb[60].mxu1 }
 0x1fe   : > { %v1099_v8 = vadd.f32 %v2810_v7, %v3238_v24  ;;  %v1090_v9 = vpop.f32.mrb[61].mxu1 }
 0x1ff   : > { %v1091_v10 = vadd.f32 %v1090_v9, %v3238_v24  ;;  %v2811_v11 = vpop.f32.mrb[62].mxu1  ;;  %2872 = vmatprep.mubr.msk.bf16.mxu0 %vm346_vm0, %v1309_v6 }
 0x200   : > { %v1102_v12 = vadd.f32 %v2811_v11, %v3238_v24  ;;  %v1093_v13 = vpop.f32.mrb[63].mxu1  ;;  %2873 = vmatmul.mubr.msk.bf16.gmra.mrb[56].mxu0 %vm346_vm0, %v1310_v5  ;;  %v1263_v15 = vmax.f32 %v1099_v8, 0.0 }
 0x201   : > { %v1094_v14 = vadd.f32 %v1093_v13, %v3238_v24  ;;  %v1261_v17 = vmax.f32 %v1091_v10, 0.0 }
 0x202   : > { %v1264_v16 = vmax.f32 %v1102_v12, 0.0 }
 0x203   : > { %v1262_v20 = vmax.f32 %v1094_v14, 0.0 }
 0x204   : > { %v1312_v21 = vpack.c.bf16 %v1264_v16, %v1263_v15 }
 0x205   : > { %v1311_v25 = vpack.c.bf16 %v1262_v20, %v1261_v17  ;;  %v2814_v26 = vpop.f32.mrb[64].mxu1 }
 0x206   : > { %v1115_v28 = vadd.f32 %v2814_v26, %v3238_v24  ;;  %v1106_v29 = vpop.f32.mrb[65].mxu1 }
 0x207   : > { %v1107_v30 = vadd.f32 %v1106_v29, %v3238_v24  ;;  %v2815_v31 = vpop.f32.mrb[66].mxu1  ;;  %2876 = vmatprep.mubr.msk.bf16.mxu0 %vm346_vm0, %v1311_v25 }
 0x208   : > { %v1118_v32 = vadd.f32 %v2815_v31, %v3238_v24  ;;  %v1109_v33 = vpop.f32.mrb[67].mxu1  ;;  %2877 = vmatmul.mubr.msk.bf16.gmra.mrb[60].mxu0 %vm346_vm0, %v1312_v21  ;;  %v1267_v35 = vmax.f32 %v1115_v28, 0.0 }
 0x209   : > { %v1110_v34 = vadd.f32 %v1109_v33, %v3238_v24  ;;  %v1265_v27 = vmax.f32 %v1107_v30, 0.0 }
 0x20a   : > { %v1268_v36 = vmax.f32 %v1118_v32, 0.0 }
 0x20b   : > { %v1266_v40 = vmax.f32 %v1110_v34, 0.0 }
 0x20c   : > { %v1314_v55 = vpack.c.bf16 %v1268_v36, %v1267_v35 }
 0x20d   : > { %v1313_v58 = vpack.c.bf16 %v1266_v40, %v1265_v27  ;;  %v2818_v19 = vpop.f32.mrb[68].mxu1 }
 0x20e   : > { %v1131_v22 = vadd.f32 %v2818_v19, %v3238_v24  ;;  %v1122_v52 = vpop.f32.mrb[69].mxu1 }
 0x20f   : > { %v1123_v56 = vadd.f32 %v1122_v52, %v3238_v24  ;;  %v2819_v18 = vpop.f32.mrb[70].mxu1  ;;  %2880 = vmatprep.mubr.msk.bf16.mxu0 %vm346_vm0, %v1313_v58 }
 0x210   : > { %v1134_v23 = vadd.f32 %v2819_v18, %v3238_v24  ;;  %v1125_v38 = vpop.f32.mrb[71].mxu1  ;;  %2881 = vmatmul.mubr.msk.bf16.gmra.mrb[64].mxu0 %vm346_vm0, %v1314_v55  ;;  %v1271_v42 = vmax.f32 %v1131_v22, 0.0 }
 0x211   : > { %v1126_v41 = vadd.f32 %v1125_v38, %v3238_v24  ;;  %v1269_v44 = vmax.f32 %v1123_v56, 0.0 }
 0x212   : > { %v1272_v43 = vmax.f32 %v1134_v23, 0.0 }
 0x213   : > { %v1270_v45 = vmax.f32 %v1126_v41, 0.0 }
 0x214   : > { %v1316_v39 = vpack.c.bf16 %v1272_v43, %v1271_v42 }
 0x215   : > { %v1315_v46 = vpack.c.bf16 %v1270_v45, %v1269_v44  ;;  %v2822_v47 = vpop.f32.mrb[72].mxu1 }
 0x216   : > { %v1147_v48 = vadd.f32 %v2822_v47, %v3238_v24  ;;  %v1138_v49 = vpop.f32.mrb[73].mxu1 }
 0x217   : > { %v1139_v50 = vadd.f32 %v1138_v49, %v3238_v24  ;;  %v2823_v51 = vpop.f32.mrb[74].mxu1  ;;  %2884 = vmatprep.mubr.msk.bf16.mxu0 %vm346_vm0, %v1315_v46 }
 0x218   : > { %v1150_v53 = vadd.f32 %v2823_v51, %v3238_v24  ;;  %v1141_v54 = vpop.f32.mrb[75].mxu1  ;;  %2885 = vmatmul.mubr.msk.bf16.gmra.mrb[68].mxu0 %vm346_vm0, %v1316_v39  ;;  %v1275_v59 = vmax.f32 %v1147_v48, 0.0 }
 0x219   : > { %v1142_v57 = vadd.f32 %v1141_v54, %v3238_v24  ;;  %v1273_v61 = vmax.f32 %v1139_v50, 0.0 }
 0x21a   : > { %v1276_v60 = vmax.f32 %v1150_v53, 0.0 }
 0x21b   : > { %v1274_v62 = vmax.f32 %v1142_v57, 0.0 }
 0x21c   : > { %v1318_v63 = vpack.c.bf16 %v1276_v60, %v1275_v59 }
 0x21d   : > { %v1317_v0 = vpack.c.bf16 %v1274_v62, %v1273_v61  ;;  %v2826_v1 = vpop.f32.mrb[76].mxu1 }
 0x21e   : > { %v1163_v2 = vadd.f32 %v2826_v1, %v3238_v24  ;;  %v1154_v3 = vpop.f32.mrb[77].mxu1 }
 0x21f   : > { %v1155_v4 = vadd.f32 %v1154_v3, %v3238_v24  ;;  %v2827_v5 = vpop.f32.mrb[78].mxu1  ;;  %2888 = vmatprep.mubr.msk.bf16.mxu0 %vm346_vm0, %v1317_v0 }
 0x220   : > { %v1166_v6 = vadd.f32 %v2827_v5, %v3238_v24  ;;  %v1157_v7 = vpop.f32.mrb[79].mxu1  ;;  %2889 = vmatmul.mubr.msk.bf16.gmra.mrb[72].mxu0 %vm346_vm0, %v1318_v63  ;;  %v1279_v9 = vmax.f32 %v1163_v2, 0.0 }
 0x221   : > { %v1158_v8 = vadd.f32 %v1157_v7, %v3238_v24  ;;  %v1277_v11 = vmax.f32 %v1155_v4, 0.0 }
 0x222   : > { %v1280_v10 = vmax.f32 %v1166_v6, 0.0 }
 0x223   : > { %v1278_v12 = vmax.f32 %v1158_v8, 0.0 }
 0x224   : > { %v1320_v13 = vpack.c.bf16 %v1280_v10, %v1279_v9  ;;  %v1335_v9 = vsub.s32 2, %v3093_v37  ;;  %v2930_v10 = vld [vmem:[%s3451_s4] sm:$0x7] }
 0x225   : > { %v1319_v14 = vpack.c.bf16 %v1278_v12, %v1277_v11  ;;  %v2830_v15 = vpop.f32.mrb[80].mxu1 }
 0x226   : > { %v1179_v16 = vadd.f32 %v2830_v15, %v3238_v24  ;;  %v1170_v17 = vpop.f32.mrb[81].mxu1  ;;  %v3340_v11 = vrot.slane %v2930_v10, %v1335_v9 }
 0x227   : > { %v1171_v20 = vadd.f32 %v1170_v17, %v3238_v24  ;;  %v2831_v21 = vpop.f32.mrb[82].mxu1  ;;  %2892 = vmatprep.mubr.msk.bf16.mxu0 %vm346_vm0, %v1319_v14 }
 0x228   : > { %v1182_v25 = vadd.f32 %v2831_v21, %v3238_v24  ;;  %v1173_v26 = vpop.f32.mrb[83].mxu1  ;;  %2893 = vmatmul.mubr.msk.bf16.gmra.mrb[76].mxu0 %vm346_vm0, %v1320_v13  ;;  %v1283_v29 = vmax.f32 %v1179_v16, 0.0 }
 0x229   : > { %v1174_v28 = vadd.f32 %v1173_v26, %v3238_v24  ;;  %v1281_v31 = vmax.f32 %v1171_v20, 0.0 }
 0x22a   : > { %v1284_v30 = vmax.f32 %v1182_v25, 0.0 }
 0x22b   : > { %v1282_v32 = vmax.f32 %v1174_v28, 0.0 }
 0x22c   : > { %v1322_v33 = vpack.c.bf16 %v1284_v30, %v1283_v29 }
 0x22d   : > { %v1321_v34 = vpack.c.bf16 %v1282_v32, %v1281_v31  ;;  %v2834_v35 = vpop.f32.mrb[84].mxu1 }
 0x22e   : > { %v1195_v36 = vadd.f32 %v2834_v35, %v3238_v24  ;;  %v1186_v27 = vpop.f32.mrb[85].mxu1 }
 0x22f   : > { %v1187_v40 = vadd.f32 %v1186_v27, %v3238_v24  ;;  %v2835_v55 = vpop.f32.mrb[86].mxu1  ;;  %2896 = vmatprep.mubr.msk.bf16.mxu0 %vm346_vm0, %v1321_v34 }
 0x230   : > { %v1198_v58 = vadd.f32 %v2835_v55, %v3238_v24  ;;  %v1189_v19 = vpop.f32.mrb[87].mxu1  ;;  %2897 = vmatmul.mubr.msk.bf16.gmra.mrb[80].mxu0 %vm346_vm0, %v1322_v33  ;;  %v1287_v52 = vmax.f32 %v1195_v36, 0.0 }
 0x231   : > { %v1190_v22 = vadd.f32 %v1189_v19, %v3238_v24  ;;  %v1285_v18 = vmax.f32 %v1187_v40, 0.0 }
 0x232   : > { %v1288_v56 = vmax.f32 %v1198_v58, 0.0 }
 0x233   : > { %v1286_v23 = vmax.f32 %v1190_v22, 0.0 }
 0x234   : > { %v1324_v38 = vpack.c.bf16 %v1288_v56, %v1287_v52 }
 0x235   : > { %v1323_v41 = vpack.c.bf16 %v1286_v23, %v1285_v18  ;;  %v2838_v42 = vpop.f32.mrb[88].mxu1 }
 0x236   : > { %v1211_v43 = vadd.f32 %v2838_v42, %v3238_v24  ;;  %v1202_v44 = vpop.f32.mrb[89].mxu1 }
 0x237   : > { %v1203_v45 = vadd.f32 %v1202_v44, %v3238_v24  ;;  %v2839_v39 = vpop.f32.mrb[90].mxu1  ;;  %2900 = vmatprep.mubr.msk.bf16.mxu0 %vm346_vm0, %v1323_v41 }
 0x238   : > { %v1214_v46 = vadd.f32 %v2839_v39, %v3238_v24  ;;  %v1205_v47 = vpop.f32.mrb[91].mxu1  ;;  %2901 = vmatmul.mubr.msk.bf16.gmra.mrb[84].mxu0 %vm346_vm0, %v1324_v38  ;;  %v1291_v49 = vmax.f32 %v1211_v43, 0.0 }
 0x239   : > { %v1206_v48 = vadd.f32 %v1205_v47, %v3238_v24  ;;  %v1289_v51 = vmax.f32 %v1203_v45, 0.0 }
 0x23a   : > { %v1292_v50 = vmax.f32 %v1214_v46, 0.0 }
 0x23b   : > { %v1290_v53 = vmax.f32 %v1206_v48, 0.0 }
 0x23c   : > { %v1326_v54 = vpack.c.bf16 %v1292_v50, %v1291_v49 }
 0x23d   : > { %v1325_v57 = vpack.c.bf16 %v1290_v53, %v1289_v51  ;;  %v2842_v59 = vpop.f32.mrb[92].mxu1 }
 0x23e   : > { %v1227_v60 = vadd.f32 %v2842_v59, %v3238_v24  ;;  %v1218_v61 = vpop.f32.mrb[93].mxu1 }
 0x23f   : > { %v1219_v62 = vadd.f32 %v1218_v61, %v3238_v24  ;;  %v2843_v63 = vpop.f32.mrb[94].mxu1  ;;  %2904 = vmatprep.mubr.msk.bf16.mxu0 %vm346_vm0, %v1325_v57 }
 0x240   : > { %v1230_v0 = vadd.f32 %v2843_v63, %v3238_v24  ;;  %v1221_v1 = vpop.f32.mrb[95].mxu1  ;;  %2905 = vmatmul.mubr.msk.bf16.gmra.mrb[88].mxu0 %vm346_vm0, %v1326_v54  ;;  %v1295_v3 = vmax.f32 %v1227_v60, 0.0 }
 0x241   : > { %v1222_v2 = vadd.f32 %v1221_v1, %v3238_v24  ;;  %v1293_v5 = vmax.f32 %v1219_v62, 0.0 }
 0x242   : > { %v1296_v4 = vmax.f32 %v1230_v0, 0.0 }
 0x243   : > { %v1294_v6 = vmax.f32 %v1222_v2, 0.0 }
 0x244   : > { %v1328_v7 = vpack.c.bf16 %v1296_v4, %v1295_v3 }
 0x245   : > { %v1327_v8 = vpack.c.bf16 %v1294_v6, %v1293_v5 }
 0x247   : > { %2908 = vmatprep.mubr.msk.bf16.mxu0 %vm346_vm0, %v1327_v8 }
 0x248   : > { %2909 = vmatmul.mubr.msk.bf16.gmra.mrb[92].mxu0 %vm346_vm0, %v1328_v7 }
 0x2a3   : > { %v2850_v24 = vpop.f32.mrb[32].mxu0 }
 0x2a4   : > { %v1488_v12 = vadd.f32 %v2850_v24, %v3340_v11  ;;  %v1479_v13 = vpop.f32.mrb[33].mxu0 }
 0x2a5   : > { %v1480_v14 = vadd.f32 %v1479_v13, %v3340_v11  ;;  %v2851_v15 = vpop.f32.mrb[34].mxu0 }
 0x2a6   : > { %v1491_v16 = vadd.f32 %v2851_v15, %v3340_v11  ;;  %v1482_v17 = vpop.f32.mrb[35].mxu0  ;;  %v1736_v37 = vmax.f32 %v1488_v12, 0.0 }
 0x2a7   : > { %v1483_v20 = vadd.f32 %v1482_v17, %v3340_v11  ;;  %v1734_v25 = vmax.f32 %v1480_v14, 0.0 }
 0x2a8   : > { %v1737_v21 = vmax.f32 %v1491_v16, 0.0 }
 0x2a9   : > { %v1735_v26 = vmax.f32 %v1483_v20, 0.0 }
 0x2aa   : > { %v2423_v28 = vpack.c.bf16 %v1737_v21, %v1736_v37 }
 0x2ab   : > { %v2418_v29 = vpack.c.bf16 %v1735_v26, %v1734_v25  ;;  %v2854_v30 = vpop.f32.mrb[36].mxu0 }
 0x2ac   : > { %2575 = vst [vmem:[%s3350_s20 + $0x8] sm:$0xff] %v2423_v28   ;;  %v1504_v31 = vadd.f32 %v2854_v30, %v3340_v11  ;;  %v1495_v32 = vpop.f32.mrb[37].mxu0 }
 0x2ad   : > { %2419 = vst [vmem:[%s3350_s20] sm:$0xff] %v2418_v29   ;;  %v1496_v33 = vadd.f32 %v1495_v32, %v3340_v11  ;;  %v2855_v34 = vpop.f32.mrb[38].mxu0 }
 0x2ae   : > { %v1507_v35 = vadd.f32 %v2855_v34, %v3340_v11  ;;  %v1498_v36 = vpop.f32.mrb[39].mxu0  ;;  %v1740_v40 = vmax.f32 %v1504_v31, 0.0 }
 0x2af   : > { %v1499_v27 = vadd.f32 %v1498_v36, %v3340_v11  ;;  %v1738_v58 = vmax.f32 %v1496_v33, 0.0 }
 0x2b0   : > { %v1741_v55 = vmax.f32 %v1507_v35, 0.0 }
 0x2b1   : > { %v1739_v19 = vmax.f32 %v1499_v27, 0.0 }
 0x2b2   : > { %v2433_v22 = vpack.c.bf16 %v1741_v55, %v1740_v40 }
 0x2b3   : > { %v2428_v52 = vpack.c.bf16 %v1739_v19, %v1738_v58  ;;  %v2858_v56 = vpop.f32.mrb[40].mxu0 }
 0x2b4   : > { %2577 = vst [vmem:[%s3350_s20 + $0x18] sm:$0xff] %v2433_v22   ;;  %v1520_v18 = vadd.f32 %v2858_v56, %v3340_v11  ;;  %v1511_v23 = vpop.f32.mrb[41].mxu0 }
 0x2b5   : > { %2576 = vst [vmem:[%s3350_s20 + $0x10] sm:$0xff] %v2428_v52   ;;  %v1512_v38 = vadd.f32 %v1511_v23, %v3340_v11  ;;  %v2859_v41 = vpop.f32.mrb[42].mxu0 }
 0x2b6   : > { %v1523_v42 = vadd.f32 %v2859_v41, %v3340_v11  ;;  %v1514_v43 = vpop.f32.mrb[43].mxu0  ;;  %v1744_v45 = vmax.f32 %v1520_v18, 0.0 }
 0x2b7   : > { %v1515_v44 = vadd.f32 %v1514_v43, %v3340_v11  ;;  %v1742_v46 = vmax.f32 %v1512_v38, 0.0 }
 0x2b8   : > { %v1745_v39 = vmax.f32 %v1523_v42, 0.0 }
 0x2b9   : > { %v1743_v47 = vmax.f32 %v1515_v44, 0.0 }
 0x2ba   : > { %v2443_v48 = vpack.c.bf16 %v1745_v39, %v1744_v45 }
 0x2bb   : > { %v2438_v49 = vpack.c.bf16 %v1743_v47, %v1742_v46  ;;  %v2862_v50 = vpop.f32.mrb[44].mxu0 }
 0x2bc   : > { %2579 = vst [vmem:[%s3350_s20 + $0x28] sm:$0xff] %v2443_v48   ;;  %v1536_v51 = vadd.f32 %v2862_v50, %v3340_v11  ;;  %v1527_v53 = vpop.f32.mrb[45].mxu0 }
 0x2bd   : > { %2578 = vst [vmem:[%s3350_s20 + $0x20] sm:$0xff] %v2438_v49   ;;  %v1528_v54 = vadd.f32 %v1527_v53, %v3340_v11  ;;  %v2863_v57 = vpop.f32.mrb[46].mxu0 }
 0x2be   : > { %v1539_v59 = vadd.f32 %v2863_v57, %v3340_v11  ;;  %v1530_v60 = vpop.f32.mrb[47].mxu0  ;;  %v1748_v62 = vmax.f32 %v1536_v51, 0.0 }
 0x2bf   : > { %v1531_v61 = vadd.f32 %v1530_v60, %v3340_v11  ;;  %v1746_v0 = vmax.f32 %v1528_v54, 0.0 }
 0x2c0   : > { %v1749_v63 = vmax.f32 %v1539_v59, 0.0 }
 0x2c1   : > { %v1747_v1 = vmax.f32 %v1531_v61, 0.0 }
 0x2c2   : > { %v2453_v2 = vpack.c.bf16 %v1749_v63, %v1748_v62 }
 0x2c3   : > { %v2448_v3 = vpack.c.bf16 %v1747_v1, %v1746_v0  ;;  %v2866_v4 = vpop.f32.mrb[48].mxu0 }
 0x2c4   : > { %2581 = vst [vmem:[%s3350_s20 + $0x38] sm:$0xff] %v2453_v2   ;;  %v1552_v5 = vadd.f32 %v2866_v4, %v3340_v11  ;;  %v1543_v6 = vpop.f32.mrb[49].mxu0 }
 0x2c5   : > { %2580 = vst [vmem:[%s3350_s20 + $0x30] sm:$0xff] %v2448_v3   ;;  %v1544_v7 = vadd.f32 %v1543_v6, %v3340_v11  ;;  %v2867_v8 = vpop.f32.mrb[50].mxu0 }
 0x2c6   : > { %v1555_v9 = vadd.f32 %v2867_v8, %v3340_v11  ;;  %v1546_v10 = vpop.f32.mrb[51].mxu0  ;;  %v1752_v12 = vmax.f32 %v1552_v5, 0.0 }
 0x2c7   : > { %v1547_v24 = vadd.f32 %v1546_v10, %v3340_v11  ;;  %v1750_v14 = vmax.f32 %v1544_v7, 0.0 }
 0x2c8   : > { %v1753_v13 = vmax.f32 %v1555_v9, 0.0 }
 0x2c9   : > { %v1751_v15 = vmax.f32 %v1547_v24, 0.0 }
 0x2ca   : > { %v2463_v16 = vpack.c.bf16 %v1753_v13, %v1752_v12 }
 0x2cb   : > { %v2458_v17 = vpack.c.bf16 %v1751_v15, %v1750_v14  ;;  %v2870_v20 = vpop.f32.mrb[52].mxu0 }
 0x2cc   : > { %2583 = vst [vmem:[%s3350_s20 + $0x48] sm:$0xff] %v2463_v16   ;;  %v1568_v37 = vadd.f32 %v2870_v20, %v3340_v11  ;;  %v1559_v21 = vpop.f32.mrb[53].mxu0 }
 0x2cd   : > { %2582 = vst [vmem:[%s3350_s20 + $0x40] sm:$0xff] %v2458_v17   ;;  %v1560_v25 = vadd.f32 %v1559_v21, %v3340_v11  ;;  %v2871_v26 = vpop.f32.mrb[54].mxu0 }
 0x2ce   : > { %v1571_v28 = vadd.f32 %v2871_v26, %v3340_v11  ;;  %v1562_v29 = vpop.f32.mrb[55].mxu0  ;;  %v1756_v31 = vmax.f32 %v1568_v37, 0.0 }
 0x2cf   : > { %v1563_v30 = vadd.f32 %v1562_v29, %v3340_v11  ;;  %v1754_v33 = vmax.f32 %v1560_v25, 0.0 }
 0x2d0   : > { %v1757_v32 = vmax.f32 %v1571_v28, 0.0 }
 0x2d1   : > { %v1755_v34 = vmax.f32 %v1563_v30, 0.0 }
 0x2d2   : > { %v2473_v35 = vpack.c.bf16 %v1757_v32, %v1756_v31 }
 0x2d3   : > { %v2468_v36 = vpack.c.bf16 %v1755_v34, %v1754_v33  ;;  %v2874_v27 = vpop.f32.mrb[56].mxu0 }
 0x2d4   : > { %2585 = vst [vmem:[%s3350_s20 + $0x58] sm:$0xff] %v2473_v35   ;;  %v1584_v40 = vadd.f32 %v2874_v27, %v3340_v11  ;;  %v1575_v55 = vpop.f32.mrb[57].mxu0 }
 0x2d5   : > { %2584 = vst [vmem:[%s3350_s20 + $0x50] sm:$0xff] %v2468_v36   ;;  %v1576_v58 = vadd.f32 %v1575_v55, %v3340_v11  ;;  %v2875_v19 = vpop.f32.mrb[58].mxu0 }
 0x2d6   : > { %v1587_v22 = vadd.f32 %v2875_v19, %v3340_v11  ;;  %v1578_v52 = vpop.f32.mrb[59].mxu0  ;;  %v1760_v18 = vmax.f32 %v1584_v40, 0.0 }
 0x2d7   : > { %v1579_v56 = vadd.f32 %v1578_v52, %v3340_v11  ;;  %v1758_v38 = vmax.f32 %v1576_v58, 0.0 }
 0x2d8   : > { %v1761_v23 = vmax.f32 %v1587_v22, 0.0 }
 0x2d9   : > { %v1759_v41 = vmax.f32 %v1579_v56, 0.0 }
 0x2da   : > { %v2483_v42 = vpack.c.bf16 %v1761_v23, %v1760_v18 }
 0x2db   : > { %v2478_v43 = vpack.c.bf16 %v1759_v41, %v1758_v38  ;;  %v2878_v44 = vpop.f32.mrb[60].mxu0 }
 0x2dc   : > { %2587 = vst [vmem:[%s3350_s20 + $0x68] sm:$0xff] %v2483_v42   ;;  %v1600_v45 = vadd.f32 %v2878_v44, %v3340_v11  ;;  %v1591_v39 = vpop.f32.mrb[61].mxu0 }
 0x2dd   : > { %2586 = vst [vmem:[%s3350_s20 + $0x60] sm:$0xff] %v2478_v43   ;;  %v1592_v46 = vadd.f32 %v1591_v39, %v3340_v11  ;;  %v2879_v47 = vpop.f32.mrb[62].mxu0 }
 0x2de   : > { %v1603_v48 = vadd.f32 %v2879_v47, %v3340_v11  ;;  %v1594_v49 = vpop.f32.mrb[63].mxu0  ;;  %v1764_v51 = vmax.f32 %v1600_v45, 0.0 }
 0x2df   : > { %v1595_v50 = vadd.f32 %v1594_v49, %v3340_v11  ;;  %v1762_v54 = vmax.f32 %v1592_v46, 0.0 }
 0x2e0   : > { %v1765_v53 = vmax.f32 %v1603_v48, 0.0 }
 0x2e1   : > { %v1763_v57 = vmax.f32 %v1595_v50, 0.0 }
 0x2e2   : > { %v2493_v59 = vpack.c.bf16 %v1765_v53, %v1764_v51 }
 0x2e3   : > { %v2488_v60 = vpack.c.bf16 %v1763_v57, %v1762_v54  ;;  %v2882_v61 = vpop.f32.mrb[64].mxu0 }
 0x2e4   : > { %2589 = vst [vmem:[%s3350_s20 + $0x78] sm:$0xff] %v2493_v59   ;;  %v1616_v62 = vadd.f32 %v2882_v61, %v3340_v11  ;;  %v1607_v63 = vpop.f32.mrb[65].mxu0 }
 0x2e5   : > { %2588 = vst [vmem:[%s3350_s20 + $0x70] sm:$0xff] %v2488_v60   ;;  %v1608_v0 = vadd.f32 %v1607_v63, %v3340_v11  ;;  %v2883_v1 = vpop.f32.mrb[66].mxu0 }
 0x2e6   : > { %v1619_v2 = vadd.f32 %v2883_v1, %v3340_v11  ;;  %v1610_v3 = vpop.f32.mrb[67].mxu0  ;;  %v1768_v5 = vmax.f32 %v1616_v62, 0.0 }
 0x2e7   : > { %v1611_v4 = vadd.f32 %v1610_v3, %v3340_v11  ;;  %v1766_v7 = vmax.f32 %v1608_v0, 0.0 }
 0x2e8   : > { %v1769_v6 = vmax.f32 %v1619_v2, 0.0 }
 0x2e9   : > { %v1767_v8 = vmax.f32 %v1611_v4, 0.0 }
 0x2ea   : > { %v2503_v9 = vpack.c.bf16 %v1769_v6, %v1768_v5 }
 0x2eb   : > { %v2498_v10 = vpack.c.bf16 %v1767_v8, %v1766_v7  ;;  %v2886_v24 = vpop.f32.mrb[68].mxu0 }
 0x2ec   : > { %2591 = vst [vmem:[%s3350_s20 + $0x88] sm:$0xff] %v2503_v9   ;;  %v1632_v12 = vadd.f32 %v2886_v24, %v3340_v11  ;;  %v1623_v13 = vpop.f32.mrb[69].mxu0 }
 0x2ed   : > { %2590 = vst [vmem:[%s3350_s20 + $0x80] sm:$0xff] %v2498_v10   ;;  %v1624_v14 = vadd.f32 %v1623_v13, %v3340_v11  ;;  %v2887_v15 = vpop.f32.mrb[70].mxu0 }
 0x2ee   : > { %v1635_v16 = vadd.f32 %v2887_v15, %v3340_v11  ;;  %v1626_v17 = vpop.f32.mrb[71].mxu0  ;;  %v1772_v37 = vmax.f32 %v1632_v12, 0.0 }
 0x2ef   : > { %v1627_v20 = vadd.f32 %v1626_v17, %v3340_v11  ;;  %v1770_v25 = vmax.f32 %v1624_v14, 0.0 }
 0x2f0   : > { %v1773_v21 = vmax.f32 %v1635_v16, 0.0 }
 0x2f1   : > { %v1771_v26 = vmax.f32 %v1627_v20, 0.0 }
 0x2f2   : > { %v2513_v28 = vpack.c.bf16 %v1773_v21, %v1772_v37 }
 0x2f3   : > { %v2508_v29 = vpack.c.bf16 %v1771_v26, %v1770_v25  ;;  %v2890_v30 = vpop.f32.mrb[72].mxu0 }
 0x2f4   : > { %2593 = vst [vmem:[%s3350_s20 + $0x98] sm:$0xff] %v2513_v28   ;;  %v1648_v31 = vadd.f32 %v2890_v30, %v3340_v11  ;;  %v1639_v32 = vpop.f32.mrb[73].mxu0 }
 0x2f5   : > { %2592 = vst [vmem:[%s3350_s20 + $0x90] sm:$0xff] %v2508_v29   ;;  %v1640_v33 = vadd.f32 %v1639_v32, %v3340_v11  ;;  %v2891_v34 = vpop.f32.mrb[74].mxu0 }
 0x2f6   : > { %v1651_v35 = vadd.f32 %v2891_v34, %v3340_v11  ;;  %v1642_v36 = vpop.f32.mrb[75].mxu0  ;;  %v1776_v40 = vmax.f32 %v1648_v31, 0.0 }
 0x2f7   : > { %v1643_v27 = vadd.f32 %v1642_v36, %v3340_v11  ;;  %v1774_v58 = vmax.f32 %v1640_v33, 0.0 }
 0x2f8   : > { %v1777_v55 = vmax.f32 %v1651_v35, 0.0 }
 0x2f9   : > { %v1775_v19 = vmax.f32 %v1643_v27, 0.0 }
 0x2fa   : > { %v2523_v22 = vpack.c.bf16 %v1777_v55, %v1776_v40 }
 0x2fb   : > { %v2518_v52 = vpack.c.bf16 %v1775_v19, %v1774_v58  ;;  %v2894_v56 = vpop.f32.mrb[76].mxu0 }
 0x2fc   : > { %2595 = vst [vmem:[%s3350_s20 + $0xa8] sm:$0xff] %v2523_v22   ;;  %v1664_v18 = vadd.f32 %v2894_v56, %v3340_v11  ;;  %v1655_v23 = vpop.f32.mrb[77].mxu0 }
 0x2fd   : > { %2594 = vst [vmem:[%s3350_s20 + $0xa0] sm:$0xff] %v2518_v52   ;;  %v1656_v38 = vadd.f32 %v1655_v23, %v3340_v11  ;;  %v2895_v41 = vpop.f32.mrb[78].mxu0 }
 0x2fe   : > { %v1667_v42 = vadd.f32 %v2895_v41, %v3340_v11  ;;  %v1658_v43 = vpop.f32.mrb[79].mxu0  ;;  %v1780_v45 = vmax.f32 %v1664_v18, 0.0 }
 0x2ff   : > { %v1659_v44 = vadd.f32 %v1658_v43, %v3340_v11  ;;  %v1778_v46 = vmax.f32 %v1656_v38, 0.0 }
 0x300   : > { %v1781_v39 = vmax.f32 %v1667_v42, 0.0 }
 0x301   : > { %v1779_v47 = vmax.f32 %v1659_v44, 0.0 }
 0x302   : > { %v2533_v48 = vpack.c.bf16 %v1781_v39, %v1780_v45 }
 0x303   : > { %v2528_v49 = vpack.c.bf16 %v1779_v47, %v1778_v46  ;;  %v2898_v50 = vpop.f32.mrb[80].mxu0 }
 0x304   : > { %2597 = vst [vmem:[%s3350_s20 + $0xb8] sm:$0xff] %v2533_v48   ;;  %v1680_v51 = vadd.f32 %v2898_v50, %v3340_v11  ;;  %v1671_v53 = vpop.f32.mrb[81].mxu0 }
 0x305   : > { %2596 = vst [vmem:[%s3350_s20 + $0xb0] sm:$0xff] %v2528_v49   ;;  %v1672_v54 = vadd.f32 %v1671_v53, %v3340_v11  ;;  %v2899_v57 = vpop.f32.mrb[82].mxu0 }
 0x306   : > { %v1683_v59 = vadd.f32 %v2899_v57, %v3340_v11  ;;  %v1674_v60 = vpop.f32.mrb[83].mxu0  ;;  %v1784_v62 = vmax.f32 %v1680_v51, 0.0 }
 0x307   : > { %v1675_v61 = vadd.f32 %v1674_v60, %v3340_v11  ;;  %v1782_v0 = vmax.f32 %v1672_v54, 0.0 }
 0x308   : > { %v1785_v63 = vmax.f32 %v1683_v59, 0.0 }
 0x309   : > { %v1783_v1 = vmax.f32 %v1675_v61, 0.0 }
 0x30a   : > { %v2543_v2 = vpack.c.bf16 %v1785_v63, %v1784_v62 }
 0x30b   : > { %v2538_v3 = vpack.c.bf16 %v1783_v1, %v1782_v0  ;;  %v2902_v4 = vpop.f32.mrb[84].mxu0 }
 0x30c   : > { %2599 = vst [vmem:[%s3350_s20 + $0xc8] sm:$0xff] %v2543_v2   ;;  %v1696_v5 = vadd.f32 %v2902_v4, %v3340_v11  ;;  %v1687_v6 = vpop.f32.mrb[85].mxu0 }
 0x30d   : > { %2598 = vst [vmem:[%s3350_s20 + $0xc0] sm:$0xff] %v2538_v3   ;;  %v1688_v7 = vadd.f32 %v1687_v6, %v3340_v11  ;;  %v2903_v8 = vpop.f32.mrb[86].mxu0 }
 0x30e   : > { %v1699_v9 = vadd.f32 %v2903_v8, %v3340_v11  ;;  %v1690_v10 = vpop.f32.mrb[87].mxu0  ;;  %v1788_v12 = vmax.f32 %v1696_v5, 0.0 }
 0x30f   : > { %v1691_v24 = vadd.f32 %v1690_v10, %v3340_v11  ;;  %v1786_v14 = vmax.f32 %v1688_v7, 0.0 }
 0x310   : > { %v1789_v13 = vmax.f32 %v1699_v9, 0.0 }
 0x311   : > { %v1787_v15 = vmax.f32 %v1691_v24, 0.0 }
 0x312   : > { %v2553_v16 = vpack.c.bf16 %v1789_v13, %v1788_v12 }
 0x313   : > { %v2548_v17 = vpack.c.bf16 %v1787_v15, %v1786_v14  ;;  %v2906_v20 = vpop.f32.mrb[88].mxu0 }
 0x314   : > { %2601 = vst [vmem:[%s3350_s20 + $0xd8] sm:$0xff] %v2553_v16   ;;  %v1712_v37 = vadd.f32 %v2906_v20, %v3340_v11  ;;  %v1703_v21 = vpop.f32.mrb[89].mxu0 }
 0x315   : > { %2600 = vst [vmem:[%s3350_s20 + $0xd0] sm:$0xff] %v2548_v17   ;;  %v1704_v25 = vadd.f32 %v1703_v21, %v3340_v11  ;;  %v2907_v26 = vpop.f32.mrb[90].mxu0 }
 0x316   : > { %v1715_v28 = vadd.f32 %v2907_v26, %v3340_v11  ;;  %v1706_v29 = vpop.f32.mrb[91].mxu0  ;;  %v1792_v31 = vmax.f32 %v1712_v37, 0.0 }
 0x317   : > { %v1707_v30 = vadd.f32 %v1706_v29, %v3340_v11  ;;  %v1790_v33 = vmax.f32 %v1704_v25, 0.0 }
 0x318   : > { %v1793_v32 = vmax.f32 %v1715_v28, 0.0 }
 0x319   : > { %v1791_v34 = vmax.f32 %v1707_v30, 0.0 }
 0x31a   : > { %v2563_v35 = vpack.c.bf16 %v1793_v32, %v1792_v31 }
 0x31b   : > { %v2558_v36 = vpack.c.bf16 %v1791_v34, %v1790_v33  ;;  %v2910_v27 = vpop.f32.mrb[92].mxu0 }
 0x31c   : > { %2603 = vst [vmem:[%s3350_s20 + $0xe8] sm:$0xff] %v2563_v35   ;;  %v1728_v40 = vadd.f32 %v2910_v27, %v3340_v11  ;;  %v1719_v55 = vpop.f32.mrb[93].mxu0 }
 0x31d   : > { %2602 = vst [vmem:[%s3350_s20 + $0xe0] sm:$0xff] %v2558_v36   ;;  %v1720_v58 = vadd.f32 %v1719_v55, %v3340_v11  ;;  %v2911_v19 = vpop.f32.mrb[94].mxu0 }
 0x31e   : > { %v1731_v22 = vadd.f32 %v2911_v19, %v3340_v11  ;;  %v1722_v52 = vpop.f32.mrb[95].mxu0  ;;  %v1796_v18 = vmax.f32 %v1728_v40, 0.0 }
 0x31f   : > { %v1723_v56 = vadd.f32 %v1722_v52, %v3340_v11  ;;  %v1794_v38 = vmax.f32 %v1720_v58, 0.0 }
 0x320   : > { %v1797_v23 = vmax.f32 %v1731_v22, 0.0 }
 0x321   : > { %v1795_v41 = vmax.f32 %v1723_v56, 0.0 }
 0x322   : > { %v2573_v42 = vpack.c.bf16 %v1797_v23, %v1796_v18 }
 0x323   : > { %v2568_v43 = vpack.c.bf16 %v1795_v41, %v1794_v38 }
 0x324   : > { %2605 = vst [vmem:[%s3350_s20 + $0xf8] sm:$0xff] %v2573_v42  }
 0x325   : > { %2604 = vst [vmem:[%s3350_s20 + $0xf0] sm:$0xff] %v2568_v43  }
 0x326 PF: > { %s15_s18 = sadd.s32 1, %s2937_s18  }
 0x327   : > { %p12_p4 = scmp.ge.s32.totalorder %s15_s18, 4  }
 0x329   :  { %14 = sbr.rel (!%p12_p4) target bundleno = 1 (0x1), region = 70 }

</bundles_post_ra>
